<compile_context>
chip_gen: v7x
topology: tpu7x:2x2x1
jax: 0.10.0
libtpu: 0.0.40
codegen_flags: <defaults>
</compile_context>

<pallas_src>
import functools

import numpy as np
import jax
import jax.numpy as jnp
from jax.experimental import pallas as pl
from jax.experimental.pallas import tpu as pltpu


# ----------------------------- Pallas kernel --------------------------------

def _fused_forward_kernel(x_ref, we_ref, be_ref, op_ref, bc_ref, wh_ref, bh_ref,
                          o_ref, *, num_layers):
    """Full batch tile per grid step; activation stays a (TB, N*E) VMEM slab.

    x_ref : (TB, Din)      lane-flattened input rows, Din = V*C*T
    we_ref: (Din, NE)      block-diag patch-embedding operator, NE = V*P*E
    be_ref: (1, NE)        embedding bias (tiled over nodes)
    op_ref: (L, NE, NE)    dense per-layer Chebyshev operators
    bc_ref: (L, 1, NE)     per-layer biases (tiled over nodes)
    wh_ref: (NE, Dout)     block-diag head operator, Dout = V*T*out
    bh_ref: (1, Dout)      head bias (tiled over poses)
    o_ref : (TB, Dout)     lane-dense output rows
    """
    # Patch embedding (contraction Din, lane-dense 384-wide output).
    h = (jnp.dot(x_ref[...], we_ref[...], preferred_element_type=jnp.float32)
         + be_ref[...])                                          # (TB, NE)

    # Chebyshev graph-conv layers: each is a single wide matmul.
    for l in range(num_layers):                                  # static unroll
        h = (jnp.dot(h, op_ref[l], preferred_element_type=jnp.float32)
             + bc_ref[l])                                        # (TB, NE)

    # Head ('rec'): one matmul, 128-lane-dense store.
    o_ref[...] = (jnp.dot(h, wh_ref[...], preferred_element_type=jnp.float32)
                  + bh_ref[...]).astype(o_ref.dtype)             # (TB, Dout)


def fused_forward(x_flat, w_emb_big, b_emb_flat, ops, b_cheb_flat,
                  w_head_big, b_head_flat, *, num_layers):
    B, Din = x_flat.shape
    L, NE, _ = ops.shape
    Dout = w_head_big.shape[1]

    # Batch tile: fill 8 sublanes when possible (larger batches shard across
    # TensorCores via the parallel grid axis); tiny batches go in one step.
    TB = 8 if (B >= 8 and B % 8 == 0) else B
    grid = (B // TB,)

    kernel = functools.partial(_fused_forward_kernel, num_layers=num_layers)
    return pl.pallas_call(
        kernel,
        out_shape=jax.ShapeDtypeStruct((B, Dout), x_flat.dtype),
        grid=grid,
        in_specs=[
            pl.BlockSpec((TB, Din), lambda b: (b, 0)),           # batch tile
            pl.BlockSpec((Din, NE), lambda b: (0, 0)),           # resident weights
            pl.BlockSpec((1, NE), lambda b: (0, 0)),
            pl.BlockSpec((L, NE, NE), lambda b: (0, 0, 0)),
            pl.BlockSpec((L, 1, NE), lambda b: (0, 0, 0)),
            pl.BlockSpec((NE, Dout), lambda b: (0, 0)),
            pl.BlockSpec((1, Dout), lambda b: (0, 0)),
        ],
        out_specs=pl.BlockSpec((TB, Dout), lambda b: (b, 0)),
        compiler_params=pltpu.CompilerParams(
            dimension_semantics=("parallel",)),                  # 2 TCs on v7x
    )(x_flat, w_emb_big, b_emb_flat, ops, b_cheb_flat, w_head_big, b_head_flat)


# ------------------------------- Model ---------------------------------------

class PallasModel:
    """JAX/Pallas port of Model(task_name='rec'), fully fused forward."""

    def __init__(self, key, *, in_features, out_features, embedding_channels,
                 seg_len, pose_num, patch_len, patch_stride, patch_padding,
                 fusion_layer=3, cheb_k=3):
        self.in_features = in_features
        self.out_features = out_features
        self.embedding_channels = embedding_channels
        self.seg_len = seg_len
        self.pose_num = pose_num
        self.patch_len = patch_len
        self.patch_stride = patch_stride
        self.patch_padding = patch_padding
        self.fusion_layer = fusion_layer
        self.cheb_k = cheb_k

        self.patch_num = int(
            np.floor((seg_len + patch_padding - patch_len) / patch_stride) + 1)
        P = self.patch_num
        V = pose_num
        E = embedding_channels
        C = in_features
        T = seg_len
        N = P * V                      # number of graph nodes (pose-major)
        NE = N * E

        keys = jax.random.split(key, 2 + 2 * fusion_layer + 2)
        ki = iter(range(len(keys)))

        # ---- base parameters (same distributions as the unfused version) ----
        w_emb = 0.05 * jax.random.normal(
            keys[next(ki)], (C * patch_len, E), jnp.float32)
        b_emb = 0.05 * jax.random.normal(keys[next(ki)], (E,), jnp.float32)

        cheb_params = []
        for _ in range(fusion_layer):
            w = 0.05 * jax.random.normal(
                keys[next(ki)], (cheb_k, E, E), jnp.float32)
            b = 0.05 * jax.random.normal(keys[next(ki)], (E,), jnp.float32)
            cheb_params.append((np.asarray(w), np.asarray(b)))

        w_head = 0.05 * jax.random.normal(
            keys[next(ki)], (E * P, out_features * seg_len), jnp.float32)
        b_head = 0.05 * jax.random.normal(
            keys[next(ki)], (out_features * seg_len,), jnp.float32)

        w_emb_np = np.asarray(w_emb)
        b_emb_np = np.asarray(b_emb)
        w_head_np = np.asarray(w_head)
        b_head_np = np.asarray(b_head)

        # ---- fold patch-unfold + Linear into one operator -------------------
        # W_big[(c, t), (p, e)] = w_emb[c*PL + (t - p*PS), e] when t is inside
        # patch p (zero-padded time steps beyond T contribute nothing).
        W_big = np.zeros((C * T, P * E), np.float32)
        for c in range(C):
            for p in range(P):
                for l in range(patch_len):
                    t = p * patch_stride + l
                    if t < T:
                        W_big[c * T + t, p * E:(p + 1) * E] = w_emb_np[c * patch_len + l]
        # Block-diagonal over poses: input rows are (v, c, t), output cols (v, p, e).
        w_emb_big = np.kron(np.eye(V, dtype=np.float32), W_big)       # (V*C*T, NE)
        b_emb_flat = np.tile(b_emb_np, N).reshape(1, NE)

        # ---- Chebyshev polynomials for adj = ones(N, N) ----------------------
        adj = np.ones((N, N), np.float32)
        deg = adj.sum(axis=1)
        d_inv_sqrt = 1.0 / np.sqrt(deg)
        lap = np.eye(N, dtype=np.float32) - d_inv_sqrt[:, None] * adj * d_inv_sqrt[None, :]
        l_tilde = lap - np.eye(N, dtype=np.float32)        # lambda_max ~= 2
        t_list = [np.eye(N, dtype=np.float32), l_tilde]
        for _ in range(2, cheb_k):
            t_list.append(2.0 * l_tilde @ t_list[-1] - t_list[-2])
        cheb_t = np.stack(t_list[:cheb_k], axis=0)          # (K, N, N)

        # Dense per-layer operator on the lane-flat (n, e) feature axis:
        #   Op[(n,e),(m,f)] = sum_k T_k[m,n] * W_k[e,f]   (y_flat = h_flat @ Op)
        ops, bcs = [], []
        for w, b in cheb_params:
            op = np.einsum('kmn,kef->nemf', cheb_t, w.astype(np.float32))
            ops.append(op.reshape(NE, NE))
            bcs.append(np.tile(b.astype(np.float32), N))
        ops = np.stack(ops, axis=0)                          # (L, NE, NE)
        bcs = np.stack(bcs, axis=0).reshape(fusion_layer, 1, NE)

        # ---- head: block-diagonal over poses ---------------------------------
        w_head_big = np.kron(np.eye(V, dtype=np.float32), w_head_np)  # (NE, V*out*T)
        b_head_flat = np.tile(b_head_np, V).reshape(1, V * out_features * seg_len)

        # Device-resident folded parameters.
        self.w_emb_big = jnp.asarray(w_emb_big)
        self.b_emb_flat = jnp.asarray(b_emb_flat)
        self.ops = jnp.asarray(ops)
        self.b_cheb_flat = jnp.asarray(bcs)
        self.w_head_big = jnp.asarray(w_head_big)
        self.b_head_flat = jnp.asarray(b_head_flat)

    def __call__(self, x):
        B, C, T, V = x.shape
        assert C == self.in_features and T == self.seg_len and V == self.pose_num

        # Lane-flatten the input: (B, C, T, V) -> (B, V*C*T). Tiny one-shot
        # transpose in the wrapper; the patch unfold itself lives in w_emb_big.
        x_flat = jnp.transpose(x, (0, 3, 1, 2)).reshape(B, V * C * T)

        y_flat = fused_forward(
            x_flat, self.w_emb_big, self.b_emb_flat, self.ops,
            self.b_cheb_flat, self.w_head_big, self.b_head_flat,
            num_layers=self.fusion_layer)                    # (B, V*T*out)

        # Permute/reshape in the wrapper (kernel store stays 128-lane dense):
        # matches y.reshape(b, v, t, -1).permute(0, 3, 2, 1) of the reference.
        y = y_flat.reshape(B, V, T, self.out_features)
        return jnp.transpose(y, (0, 3, 2, 1))                # (B, out, T, V)


# ------------------------------- main ----------------------------------------

if __name__ == "__main__":
    key = jax.random.PRNGKey(0)
    k_in, k_param = jax.random.split(key)

    # Small, self-consistent config (task_name='rec').
    B, C, T, V = 2, 4, 8, 4          # batch, in_features, seg_len, pose_num
    model = PallasModel(
        k_param,
        in_features=C, out_features=4, embedding_channels=32,
        seg_len=T, pose_num=V,
        patch_len=4, patch_stride=2, patch_padding=0,
        fusion_layer=3, cheb_k=3)

    x = jax.random.normal(k_in, (B, C, T, V), jnp.float32)

    y = model(x)
    y = jax.block_until_ready(y)

    assert y.shape == (B, model.out_features, T, V), y.shape
    assert jnp.all(jnp.isfinite(y))
    print("KERNEL_OK")
</pallas_src>

<mosaic_0001>
module attributes {stable_mosaic.version = 11 : i64} {
  func.func @_fused_forward_kernel(%arg0: i32, %arg1: memref<2x128xf32, #tpu.memory_space<vmem>>, %arg2: memref<128x384xf32, #tpu.memory_space<vmem>>, %arg3: memref<1x384xf32, #tpu.memory_space<vmem>>, %arg4: memref<3x384x384xf32, #tpu.memory_space<vmem>>, %arg5: memref<3x1x384xf32, #tpu.memory_space<vmem>>, %arg6: memref<384x128xf32, #tpu.memory_space<vmem>>, %arg7: memref<1x128xf32, #tpu.memory_space<vmem>>, %arg8: memref<2x128xf32, #tpu.memory_space<vmem>>) attributes {dimension_semantics = [#tpu.dimension_semantics<parallel>], iteration_bounds = array<i64: 1>, scalar_prefetch = 0 : i64, scratch_operands = 0 : i64, tpu.core_type = #tpu.core_type<tc>, window_params = [{transform_indices = @transform_0, window_bounds = array<i64: 2, 128>}, {pipeline_mode = #tpu.pipeline_mode<synchronous>, transform_indices = @transform_1, window_bounds = array<i64: 128, 384>}, {pipeline_mode = #tpu.pipeline_mode<synchronous>, transform_indices = @transform_2, window_bounds = array<i64: 1, 384>}, {pipeline_mode = #tpu.pipeline_mode<synchronous>, transform_indices = @transform_3, window_bounds = array<i64: 3, 384, 384>}, {pipeline_mode = #tpu.pipeline_mode<synchronous>, transform_indices = @transform_4, window_bounds = array<i64: 3, 1, 384>}, {pipeline_mode = #tpu.pipeline_mode<synchronous>, transform_indices = @transform_5, window_bounds = array<i64: 384, 128>}, {pipeline_mode = #tpu.pipeline_mode<synchronous>, transform_indices = @transform_6, window_bounds = array<i64: 1, 128>}, {transform_indices = @transform_7, window_bounds = array<i64: 2, 128>}]} {
    %c0 = arith.constant 0 : index
    %c0_0 = arith.constant 0 : index
    %0 = vector.load %arg1[%c0, %c0_0] : memref<2x128xf32, #tpu.memory_space<vmem>>, vector<2x128xf32>
    %c0_1 = arith.constant 0 : index
    %c0_2 = arith.constant 0 : index
    %1 = vector.load %arg2[%c0_1, %c0_2] : memref<128x384xf32, #tpu.memory_space<vmem>>, vector<128x384xf32>
    %cst = arith.constant dense<0.000000e+00> : vector<2x384xf32>
    %2 = tpu.matmul %0, %1, %cst {dimension_numbers = #tpu.dot_dimension_numbers<[1], [0], [0], [1], [0, 0, 1, 1], [], []>} : vector<2x128xf32>, vector<128x384xf32>, vector<2x384xf32> -> vector<2x384xf32>
    %c0_3 = arith.constant 0 : index
    %c0_4 = arith.constant 0 : index
    %3 = vector.load %arg3[%c0_3, %c0_4] : memref<1x384xf32, #tpu.memory_space<vmem>>, vector<1x384xf32>
    %4 = vector.broadcast %3 : vector<1x384xf32> to vector<2x384xf32>
    %5 = arith.addf %2, %4 : vector<2x384xf32>
    %c0_5 = arith.constant 0 : index
    %c0_6 = arith.constant 0 : index
    %c0_7 = arith.constant 0 : index
    %6 = vector.load %arg4[%c0_5, %c0_6, %c0_7] : memref<3x384x384xf32, #tpu.memory_space<vmem>>, vector<1x384x384xf32>
    %7 = vector.shape_cast %6 : vector<1x384x384xf32> to vector<384x384xf32>
    %cst_8 = arith.constant dense<0.000000e+00> : vector<2x384xf32>
    %8 = tpu.matmul %5, %7, %cst_8 {dimension_numbers = #tpu.dot_dimension_numbers<[1], [0], [0], [1], [0, 0, 1, 1], [], []>} : vector<2x384xf32>, vector<384x384xf32>, vector<2x384xf32> -> vector<2x384xf32>
    %c0_9 = arith.constant 0 : index
    %c0_10 = arith.constant 0 : index
    %c0_11 = arith.constant 0 : index
    %9 = vector.load %arg5[%c0_9, %c0_10, %c0_11] : memref<3x1x384xf32, #tpu.memory_space<vmem>>, vector<1x1x384xf32>
    %10 = vector.shape_cast %9 : vector<1x1x384xf32> to vector<1x384xf32>
    %11 = vector.broadcast %10 : vector<1x384xf32> to vector<2x384xf32>
    %12 = arith.addf %8, %11 : vector<2x384xf32>
    %c1 = arith.constant 1 : index
    %c0_12 = arith.constant 0 : index
    %c0_13 = arith.constant 0 : index
    %13 = vector.load %arg4[%c1, %c0_12, %c0_13] : memref<3x384x384xf32, #tpu.memory_space<vmem>>, vector<1x384x384xf32>
    %14 = vector.shape_cast %13 : vector<1x384x384xf32> to vector<384x384xf32>
    %cst_14 = arith.constant dense<0.000000e+00> : vector<2x384xf32>
    %15 = tpu.matmul %12, %14, %cst_14 {dimension_numbers = #tpu.dot_dimension_numbers<[1], [0], [0], [1], [0, 0, 1, 1], [], []>} : vector<2x384xf32>, vector<384x384xf32>, vector<2x384xf32> -> vector<2x384xf32>
    %c1_15 = arith.constant 1 : index
    %c0_16 = arith.constant 0 : index
    %c0_17 = arith.constant 0 : index
    %16 = vector.load %arg5[%c1_15, %c0_16, %c0_17] : memref<3x1x384xf32, #tpu.memory_space<vmem>>, vector<1x1x384xf32>
    %17 = vector.shape_cast %16 : vector<1x1x384xf32> to vector<1x384xf32>
    %18 = vector.broadcast %17 : vector<1x384xf32> to vector<2x384xf32>
    %19 = arith.addf %15, %18 : vector<2x384xf32>
    %c2 = arith.constant 2 : index
    %c0_18 = arith.constant 0 : index
    %c0_19 = arith.constant 0 : index
    %20 = vector.load %arg4[%c2, %c0_18, %c0_19] : memref<3x384x384xf32, #tpu.memory_space<vmem>>, vector<1x384x384xf32>
    %21 = vector.shape_cast %20 : vector<1x384x384xf32> to vector<384x384xf32>
    %cst_20 = arith.constant dense<0.000000e+00> : vector<2x384xf32>
    %22 = tpu.matmul %19, %21, %cst_20 {dimension_numbers = #tpu.dot_dimension_numbers<[1], [0], [0], [1], [0, 0, 1, 1], [], []>} : vector<2x384xf32>, vector<384x384xf32>, vector<2x384xf32> -> vector<2x384xf32>
    %c2_21 = arith.constant 2 : index
    %c0_22 = arith.constant 0 : index
    %c0_23 = arith.constant 0 : index
    %23 = vector.load %arg5[%c2_21, %c0_22, %c0_23] : memref<3x1x384xf32, #tpu.memory_space<vmem>>, vector<1x1x384xf32>
    %24 = vector.shape_cast %23 : vector<1x1x384xf32> to vector<1x384xf32>
    %25 = vector.broadcast %24 : vector<1x384xf32> to vector<2x384xf32>
    %26 = arith.addf %22, %25 : vector<2x384xf32>
    %c0_24 = arith.constant 0 : index
    %c0_25 = arith.constant 0 : index
    %27 = vector.load %arg6[%c0_24, %c0_25] : memref<384x128xf32, #tpu.memory_space<vmem>>, vector<384x128xf32>
    %cst_26 = arith.constant dense<0.000000e+00> : vector<2x128xf32>
    %28 = tpu.matmul %26, %27, %cst_26 {dimension_numbers = #tpu.dot_dimension_numbers<[1], [0], [0], [1], [0, 0, 1, 1], [], []>} : vector<2x384xf32>, vector<384x128xf32>, vector<2x128xf32> -> vector<2x128xf32>
    %c0_27 = arith.constant 0 : index
    %c0_28 = arith.constant 0 : index
    %29 = vector.load %arg7[%c0_27, %c0_28] : memref<1x128xf32, #tpu.memory_space<vmem>>, vector<1x128xf32>
    %30 = vector.broadcast %29 : vector<1x128xf32> to vector<2x128xf32>
    %31 = arith.addf %28, %30 : vector<2x128xf32>
    %c0_29 = arith.constant 0 : index
    %c0_30 = arith.constant 0 : index
    %32 = vector.load %arg8[%c0_29, %c0_30] : memref<2x128xf32, #tpu.memory_space<vmem>>, vector<2x128xf32>
    tpu.vector_store %arg8[%c0_29, %c0_30], %31 {strides = array<i32>} : memref<2x128xf32, #tpu.memory_space<vmem>>, vector<2x128xf32>,
    return
  }
  func.func @transform_0(%arg0: i32) -> (i32, i32) {
    %c0_i32 = arith.constant 0 : i32
    %c0_i32_0 = arith.constant 0 : i32
    return %arg0, %c0_i32 : i32, i32
  }
  func.func @transform_1(%arg0: i32) -> (i32, i32) {
    %c0_i32 = arith.constant 0 : i32
    %c0_i32_0 = arith.constant 0 : i32
    %c0_i32_1 = arith.constant 0 : i32
    return %c0_i32, %c0_i32_0 : i32, i32
  }
  func.func @transform_2(%arg0: i32) -> (i32, i32) {
    %c0_i32 = arith.constant 0 : i32
    %c0_i32_0 = arith.constant 0 : i32
    %c0_i32_1 = arith.constant 0 : i32
    return %c0_i32, %c0_i32_0 : i32, i32
  }
  func.func @transform_3(%arg0: i32) -> (i32, i32, i32) {
    %c0_i32 = arith.constant 0 : i32
    %c0_i32_0 = arith.constant 0 : i32
    %c0_i32_1 = arith.constant 0 : i32
    %c0_i32_2 = arith.constant 0 : i32
    return %c0_i32, %c0_i32_0, %c0_i32_1 : i32, i32, i32
  }
  func.func @transform_4(%arg0: i32) -> (i32, i32, i32) {
    %c0_i32 = arith.constant 0 : i32
    %c0_i32_0 = arith.constant 0 : i32
    %c0_i32_1 = arith.constant 0 : i32
    %c0_i32_2 = arith.constant 0 : i32
    return %c0_i32, %c0_i32_0, %c0_i32_1 : i32, i32, i32
  }
  func.func @transform_5(%arg0: i32) -> (i32, i32) {
    %c0_i32 = arith.constant 0 : i32
    %c0_i32_0 = arith.constant 0 : i32
    %c0_i32_1 = arith.constant 0 : i32
    return %c0_i32, %c0_i32_0 : i32, i32
  }
  func.func @transform_6(%arg0: i32) -> (i32, i32) {
    %c0_i32 = arith.constant 0 : i32
    %c0_i32_0 = arith.constant 0 : i32
    %c0_i32_1 = arith.constant 0 : i32
    return %c0_i32, %c0_i32_0 : i32, i32
  }
  func.func @transform_7(%arg0: i32) -> (i32, i32) {
    %c0_i32 = arith.constant 0 : i32
    %c0_i32_0 = arith.constant 0 : i32
    return %arg0, %c0_i32 : i32, i32
  }
}

</mosaic_0001>

<bundles_post_ra>
// kernel: tpu_custom_call.1
= control target key start
LH: loop header
LB: loop body
LE: loop exit
PB: predicated region body
PF: predicated region fallthrough
CT: control target
= control target key end

     0   :  { %12 = vsyncpa [#allocation3], 0  ;;  %s3300_s0 = inlined_call_operand.hbm [shape: f32[2,128], index: 0, kind: input, shape index: {}]   ;;  %s3301_s1 = inlined_call_operand.hbm [shape: f32[128,384], index: 1, kind: input, shape index: {}]   ;;  %s3302_s2 = inlined_call_operand.hbm [shape: f32[1,384], index: 2, kind: input, shape index: {}]   ;;  %s3303_s3 = inlined_call_operand.hbm [shape: f32[3,384,384], index: 3, kind: input, shape index: {}]   ;;  %s3304_s4 = inlined_call_operand.hbm [shape: f32[3,1,384], index: 4, kind: input, shape index: {}]   ;;  %s3305_s5 = inlined_call_operand.hbm [shape: f32[384,128], index: 5, kind: input, shape index: {}]   ;;  %s3306_s6 = inlined_call_operand.hbm [shape: f32[1,128], index: 6, kind: input, shape index: {}]   ;;  %s3307_s7 = inlined_call_operand.hbm [shape: f32[2,128], index: 7, kind: output, shape index: {}]  }
   0x1   :  { %13 = vsyncpa [#allocation6], 0 }
   0x2   :  { %14 = vsyncpa [#allocation9], 0 }
   0x3   :  { %15 = vsyncpa [#allocation12], 0 }
   0x4   :  { %16 = vsyncpa [#allocation4], 0  ;;  %s3054_s24 = smov [#allocation5]   ;;  %s2868_s28 = scalar_lea.hbm %s3301_s1, 6144 }
   0x5   :  { %s32_s25 = sshll.u32 %s3054_s24, 4  ;;  %p2869_p0 = scmp.ne.s32.totalorder %s3301_s1, %s2868_s28  ;;  %s33_s25 = int_to_ptr.vmem [resolvable:$true] %s32_s25 }
   0x6   :  { %p2872_p1 = scmp.lt.u32.totalorder %s2868_s28, %s3301_s1 }
   0x8   :  { %p2874_p2 = pnand %p2872_p1, %p2869_p0 }
   0xa   :  { %2877 = shalt.err (!%p2874_p2)
}
   0xb   :  { %s2878_s10 = scalar_lea.vmem %s33_s25, 6144  ;;  %p2883_p4 = scmp.lt.s32.totalorder %s33_s25, %s33_s25 }
   0xc   :  { %p2879_p3 = scmp.ne.s32.totalorder %s33_s25, %s2878_s10  ;;  %p2884_p5 = scmp.lt.s32.totalorder %s2878_s10, %s2878_s10 }
   0xe   :  { %p2885_p6 = por %p2884_p5, %p2883_p4 }
  0x10   :  { %p2886_p7 = pnand %p2885_p6, %p2879_p3 }
  0x12   :  { %2889 = shalt.err (!%p2886_p7)
}
  0x13   :  { %s3055_s11 = smov 384   ;;  %s3056_s12 = smov 24  }
  0x14   :  { %38 = dma.hbm_to_vmem [thread:$0]  %s3301_s1, 6144, %s33_s25, [#allocation6], %s3055_s11, %s3055_s11, %s3056_s12  }
  0x15   :  { %s3057_s15 = smov [#allocation8]   ;;  %s3058_s17 = smov [#allocation11]  }
  0x16   :  { %s54_s16 = sshll.u32 %s3057_s15, 4  ;;  %s78_s18 = sshll.u32 %s3058_s17, 4  ;;  %s55_s16 = int_to_ptr.vmem [resolvable:$true] %s54_s16  ;;  %s79_s18 = int_to_ptr.vmem [resolvable:$true] %s78_s18 }
  0x17   :  { %s2890_s21 = scalar_lea.hbm %s3303_s3, 55296 }
  0x18   :  { %p2891_p8 = scmp.ne.s32.totalorder %s3303_s3, %s2890_s21  ;;  %p2894_p9 = scmp.lt.u32.totalorder %s2890_s21, %s3303_s3 }
  0x1a   :  { %p2896_p10 = pnand %p2894_p9, %p2891_p8 }
  0x1c   :  { %2899 = shalt.err (!%p2896_p10)
}
  0x1d   :  { %s2900_s1 = scalar_lea.vmem %s55_s16, 55296  ;;  %p2905_p12 = scmp.lt.s32.totalorder %s55_s16, %s55_s16 }
  0x1e   :  { %p2901_p11 = scmp.ne.s32.totalorder %s55_s16, %s2900_s1  ;;  %p2906_p13 = scmp.lt.s32.totalorder %s2900_s1, %s2900_s1 }
  0x20   :  { %p2907_p0 = por %p2906_p13, %p2905_p12 }
  0x22   :  { %p2908_p1 = pnand %p2907_p0, %p2901_p11 }
  0x24   :  { %2911 = shalt.err (!%p2908_p1)
}
  0x25   :  { %60 = dma.hbm_to_vmem [thread:$0]  %s3303_s3, 55296, %s55_s16, [#allocation9], %s3055_s11, %s3055_s11, %s3056_s12  }
  0x26   :  { %s2912_s30 = scalar_lea.hbm %s3305_s5, 6144 }
  0x27   :  { %p2913_p2 = scmp.ne.s32.totalorder %s3305_s5, %s2912_s30  ;;  %p2916_p3 = scmp.lt.u32.totalorder %s2912_s30, %s3305_s5 }
  0x29   :  { %p2918_p4 = pnand %p2916_p3, %p2913_p2 }
  0x2b   :  { %2921 = shalt.err (!%p2918_p4)
}
  0x2c   :  { %s2922_s14 = scalar_lea.vmem %s79_s18, 6144  ;;  %p2927_p6 = scmp.lt.s32.totalorder %s79_s18, %s79_s18 }
  0x2d   :  { %p2923_p5 = scmp.ne.s32.totalorder %s79_s18, %s2922_s14  ;;  %p2928_p7 = scmp.lt.s32.totalorder %s2922_s14, %s2922_s14 }
  0x2f   :  { %p2929_p8 = por %p2928_p7, %p2927_p6 }
  0x31   :  { %p2930_p9 = pnand %p2929_p8, %p2923_p5 }
  0x33   :  { %2933 = shalt.err (!%p2930_p9)
}
  0x34   :  { %s3059_s3 = smov 128   ;;  %s3060_s11 = smov 8  }
  0x35   :  { %84 = dma.hbm_to_vmem [thread:$0]  %s3305_s5, 6144, %s79_s18, [#allocation12], %s3059_s3, %s3059_s3, %s3060_s11  }
  0x36   :  { %s3061_s16 = smov [#allocation2]   ;;  %s3062_s19 = smov [#allocation7]  }
  0x37   :  { %s23_s17 = sshll.u32 %s3061_s16, 4  ;;  %s45_s20 = sshll.u32 %s3062_s19, 4  ;;  %s24_s17 = int_to_ptr.vmem [resolvable:$true] %s23_s17  ;;  %s46_s20 = int_to_ptr.vmem [resolvable:$true] %s45_s20 }
  0x38   :  { %s2934_s23 = scalar_lea.hbm %s3300_s0, 32 }
  0x39   :  { %p2935_p10 = scmp.ne.s32.totalorder %s3300_s0, %s2934_s23  ;;  %p2938_p11 = scmp.lt.u32.totalorder %s2934_s23, %s3300_s0 }
  0x3b   :  { %p2940_p12 = pnand %p2938_p11, %p2935_p10 }
  0x3d   :  { %2943 = shalt.err (!%p2940_p12)
}
  0x3e   :  { %s2944_s5 = scalar_lea.vmem %s24_s17, 32  ;;  %p2949_p0 = scmp.lt.s32.totalorder %s24_s17, %s24_s17 }
  0x3f   :  { %p2945_p13 = scmp.ne.s32.totalorder %s24_s17, %s2944_s5  ;;  %p2950_p1 = scmp.lt.s32.totalorder %s2944_s5, %s2944_s5 }
  0x41   :  { %p2951_p2 = por %p2950_p1, %p2949_p0 }
  0x43   :  { %p2952_p3 = pnand %p2951_p2, %p2945_p13 }
  0x45   :  { %2955 = shalt.err (!%p2952_p3)
}
  0x46   :  { %26 = dma.hbm_to_vmem [thread:$0]  %s3300_s0, 32, %s24_s17, [#allocation3]  }
  0x47   :  { %s2956_s30 = scalar_lea.hbm %s3302_s2, 48 }
  0x48   :  { %p2957_p4 = scmp.ne.s32.totalorder %s3302_s2, %s2956_s30  ;;  %p2960_p5 = scmp.lt.u32.totalorder %s2956_s30, %s3302_s2 }
  0x4a   :  { %p2962_p6 = pnand %p2960_p5, %p2957_p4 }
  0x4c   :  { %2965 = shalt.err (!%p2962_p6)
}
  0x4d   :  { %s2966_s14 = scalar_lea.vmem %s46_s20, 48  ;;  %s2970_s3 = scalar_lea.vmem %s46_s20, 64 }
  0x4e   :  { %p2967_p7 = scmp.ne.s32.totalorder %s46_s20, %s2966_s14  ;;  %p2971_p8 = scmp.lt.s32.totalorder %s46_s20, %s46_s20 }
  0x4f   :  { %p2972_p9 = scmp.lt.s32.totalorder %s2970_s3, %s2966_s14 }
  0x51   :  { %p2973_p10 = por %p2972_p9, %p2971_p8 }
  0x53   :  { %p2974_p11 = pnand %p2973_p10, %p2967_p7 }
  0x55   :  { %2977 = shalt.err (!%p2974_p11)
}
  0x56   :  { %48 = dma.hbm_to_vmem [thread:$0]  %s3302_s2, 48, %s46_s20, [#allocation6]  }
  0x57   :  { %s3063_s12 = smov [#allocation10]   ;;  %s2978_s19 = scalar_lea.hbm %s3304_s4, 144 }
  0x58   :  { %s66_s15 = sshll.u32 %s3063_s12, 4  ;;  %p2979_p12 = scmp.ne.s32.totalorder %s3304_s4, %s2978_s19  ;;  %s67_s15 = int_to_ptr.vmem [resolvable:$true] %s66_s15 }
  0x59   :  { %p2982_p13 = scmp.lt.u32.totalorder %s2978_s19, %s3304_s4 }
  0x5b   :  { %p2984_p0 = pnand %p2982_p13, %p2979_p12 }
  0x5d   :  { %2987 = shalt.err (!%p2984_p0)
}
  0x5e   :  { %s2988_s26 = scalar_lea.vmem %s67_s15, 144  ;;  %s2992_s2 = scalar_lea.vmem %s67_s15, 160 }
  0x5f   :  { %p2989_p1 = scmp.ne.s32.totalorder %s67_s15, %s2988_s26  ;;  %p2993_p2 = scmp.lt.s32.totalorder %s67_s15, %s67_s15 }
  0x60   :  { %p2994_p3 = scmp.lt.s32.totalorder %s2992_s2, %s2988_s26 }
  0x62   :  { %p2995_p4 = por %p2994_p3, %p2993_p2 }
  0x64   :  { %p2996_p5 = pnand %p2995_p4, %p2989_p1 }
  0x66   :  { %2999 = shalt.err (!%p2996_p5)
}
  0x67   :  { %s3064_s20 = smov 48   ;;  %s3065_s1 = smov 3  }
  0x68   :  { %72 = dma.hbm_to_vmem [thread:$0]  %s3304_s4, 144, %s67_s15, [#allocation9], %s3064_s20, %s3064_s20, %s3065_s1  }
  0x69   :  { %s3066_s18 = smov [#allocation13]   ;;  %s3000_s30 = scalar_lea.hbm %s3306_s6, 16 }
  0x6a   :  { %s91_s27 = sshll.u32 %s3066_s18, 4  ;;  %p3001_p6 = scmp.ne.s32.totalorder %s3306_s6, %s3000_s30  ;;  %s92_s27 = int_to_ptr.vmem [resolvable:$true] %s91_s27 }
  0x6b   :  { %p3004_p7 = scmp.lt.u32.totalorder %s3000_s30, %s3306_s6 }
  0x6d   :  { %p3006_p8 = pnand %p3004_p7, %p3001_p6 }
  0x6f   :  { %3009 = shalt.err (!%p3006_p8)
}
  0x70   :  { %s3010_s14 = scalar_lea.vmem %s92_s27, 16  ;;  %s3014_s4 = scalar_lea.vmem %s92_s27, 32 }
  0x71   :  { %p3011_p9 = scmp.ne.s32.totalorder %s92_s27, %s3010_s14  ;;  %p3015_p10 = scmp.lt.s32.totalorder %s92_s27, %s92_s27 }
  0x72   :  { %p3016_p11 = scmp.lt.s32.totalorder %s3014_s4, %s3010_s14 }
  0x74   :  { %p3017_p12 = por %p3016_p11, %p3015_p10 }
  0x76   :  { %p3018_p13 = pnand %p3017_p12, %p3011_p9 }
  0x78   :  { %3021 = shalt.err (!%p3018_p13)
}
  0x79   :  { %94 = dma.hbm_to_vmem [thread:$0]  %s3306_s6, 16, %s92_s27, [#allocation12]  }
  0x7a   :  { %3044 = dma.done.wait [#allocation3], 32  }
  0x7b   :  { %3045 = vsyncadd [#allocation3], 4294967264 }
  0x7c   :  { %3046 = dma.done.wait [#allocation6], 6192  }
  0x7d   :  { %3047 = vsyncadd [#allocation6], 4294961104 }
  0x7e   :  { %3048 = dma.done.wait [#allocation9], 55440  }
  0x7f   :  { %3049 = vsyncadd [#allocation9], 4294911856 }
  0x80   :  { %3050 = dma.done.wait [#allocation12], 6160  }
  0x81   :  { %3051 = vsyncadd [#allocation12], 4294961136  ;;  %v3067_v0 = vmov 0.0   ;;  %v3068_v1 = vmov 0.0|0.0   ;;  %vm3069_vm0 = vmmov 0   ;;  %v118_v2 = vld [vmem:[#allocation5 + $0x8] sm:$0xff] }
  0x82   :  { %246 = vmatprep.mubr.f32.mxu0 %v3067_v0  ;;  %2303 = vmatprep.subr.bf16.mxu1 %v3068_v1  ;;  %v121_v3 = vld [vmem:[#allocation5 + $0x20] sm:$0xff]  ;;  %v120_v6 = vld [vmem:[#allocation5 + $0x18] sm:$0xff]  ;;  %v127_v8 = vld [vmem:[#allocation5 + $0x50] sm:$0xff]  ;;  %s3070_s6 = smov [#allocation14]  }
  0x83   :  { %2128 = vmatprep.mubr.msk.f32.mxu1 %vm3069_vm0, %v3067_v0  ;;  %v117_v4 = vld [vmem:[#allocation5] sm:$0xff]  ;;  %v2271_v5 = vpack.c.bf16 %v121_v3, %v118_v2  ;;  %v124_v7 = vld [vmem:[#allocation5 + $0x38] sm:$0xff]  ;;  %v123_v11 = vld [vmem:[#allocation5 + $0x30] sm:$0xff]  ;;  %s1858_s11 = sshll.u32 %s3070_s6, 4  ;;  %s1859_s11 = int_to_ptr.vmem [resolvable:$true] %s1858_s11 }
  0x84   :  { %v2273_v9 = vpack.c.bf16 %v120_v6, %v117_v4  ;;  %v2275_v10 = vpack.c.bf16 %v127_v8, %v124_v7  ;;  %v126_v12 = vld [vmem:[#allocation5 + $0x48] sm:$0xff]  ;;  %v133_v14 = vld [vmem:[#allocation5 + $0x80] sm:$0xff]  ;;  %v132_v18 = vld [vmem:[#allocation5 + $0x78] sm:$0xff]  ;;  %s3022_s12 = scalar_lea.vmem %s1859_s11, 32  ;;  %p3027_p1 = scmp.lt.s32.totalorder %s1859_s11, %s1859_s11 }
  0x85   :  { %v130_v13 = vld [vmem:[#allocation5 + $0x68] sm:$0xff]  ;;  %2272 = vmatprep.subr.bf16.mxu0 %v2271_v5  ;;  %v2277_v15 = vpack.c.bf16 %v126_v12, %v123_v11  ;;  %v129_v17 = vld [vmem:[#allocation5 + $0x60] sm:$0xff]  ;;  %v136_v19 = vld [vmem:[#allocation5 + $0x98] sm:$0xff]  ;;  %p3023_p0 = scmp.ne.s32.totalorder %s1859_s11, %s3022_s12  ;;  %p3028_p2 = scmp.lt.s32.totalorder %s3022_s12, %s3022_s12 }
  0x86   :  { %2274 = vmatpush1.bf16.msra.mxu0 %v2273_v9  ;;  %v2279_v16 = vpack.c.bf16 %v133_v14, %v130_v13  ;;  %v139_v20 = vld [vmem:[#allocation5 + $0xb0] sm:$0xff]  ;;  %v2281_v21 = vpack.c.bf16 %v132_v18, %v129_v17  ;;  %v138_v24 = vld [vmem:[#allocation5 + $0xa8] sm:$0xff]  ;;  %v145_v26 = vld [vmem:[#allocation5 + $0xe0] sm:$0xff] }
  0x87   :  { %2276 = vmatprep.subr.bf16.mxu0 %v2275_v10  ;;  %v2283_v22 = vpack.c.bf16 %v139_v20, %v136_v19  ;;  %v135_v23 = vld [vmem:[#allocation5 + $0x90] sm:$0xff]  ;;  %v142_v25 = vld [vmem:[#allocation5 + $0xc8] sm:$0xff]  ;;  %v125_v29 = vld [vmem:[#allocation5 + $0x40] sm:$0xff]  ;;  %p3029_p3 = por %p3028_p2, %p3027_p1 }
  0x88   :  { %v119_v27 = vld [vmem:[#allocation5 + $0x10] sm:$0xff]  ;;  %v122_v28 = vld [vmem:[#allocation5 + $0x28] sm:$0xff]  ;;  %v2285_v30 = vpack.c.bf16 %v138_v24, %v135_v23  ;;  %v128_v32 = vld [vmem:[#allocation5 + $0x58] sm:$0xff]  ;;  %v2287_v33 = vpack.c.bf16 %v145_v26, %v142_v25 }
  0x89   :  { %v2304_v31 = vpack.c.bf16 %v122_v28, %v119_v27  ;;  %v141_v34 = vld [vmem:[#allocation5 + $0xc0] sm:$0xff]  ;;  %v144_v35 = vld [vmem:[#allocation5 + $0xd8] sm:$0xff]  ;;  %v151_v37 = vld [vmem:[#allocation5 + $0x110] sm:$0xff]  ;;  %v2307_v38 = vpack.c.bf16 %v128_v32, %v125_v29  ;;  %p3030_p4 = pnand %p3029_p3, %p3023_p0 }
  0x8a   :  { %2278 = vmatpush1.bf16.msra.mxu0 %v2277_v15  ;;  %v148_v36 = vld [vmem:[#allocation5 + $0xf8] sm:$0xff]  ;;  %v131_v39 = vld [vmem:[#allocation5 + $0x70] sm:$0xff]  ;;  %v134_v40 = vld [vmem:[#allocation5 + $0x88] sm:$0xff]  ;;  %v2289_v41 = vpack.c.bf16 %v144_v35, %v141_v34 }
  0x8b   :  { %2280 = vmatprep.subr.bf16.mxu0 %v2279_v16  ;;  %2305 = vmatpush3.bf16.msra.mxu1 %v2304_v31  ;;  %v2291_v42 = vpack.c.bf16 %v151_v37, %v148_v36  ;;  %v147_v43 = vld [vmem:[#allocation5 + $0xf0] sm:$0xff]  ;;  %v150_v44 = vld [vmem:[#allocation5 + $0x108] sm:$0xff]  ;;  %v157_v46 = vld [vmem:[#allocation5 + $0x140] sm:$0xff]  ;;  %v2310_v47 = vpack.c.bf16 %v134_v40, %v131_v39 }
  0x8c   :  { %2306 = vmatprep.subr.bf16.mxu1 %v3068_v1  ;;  %v154_v45 = vld [vmem:[#allocation5 + $0x128] sm:$0xff]  ;;  %v137_v48 = vld [vmem:[#allocation5 + $0xa0] sm:$0xff]  ;;  %v140_v49 = vld [vmem:[#allocation5 + $0xb8] sm:$0xff]  ;;  %v2293_v50 = vpack.c.bf16 %v150_v44, %v147_v43 }
  0x8d   :  { %v2295_v51 = vpack.c.bf16 %v157_v46, %v154_v45  ;;  %v153_v52 = vld [vmem:[#allocation5 + $0x120] sm:$0xff]  ;;  %v156_v53 = vld [vmem:[#allocation5 + $0x138] sm:$0xff]  ;;  %v163_v55 = vld [vmem:[#allocation5 + $0x170] sm:$0xff]  ;;  %v2313_v56 = vpack.c.bf16 %v140_v49, %v137_v48 }
  0x8e   :  { %2282 = vmatpush1.bf16.msra.mxu0 %v2281_v21  ;;  %v160_v54 = vld [vmem:[#allocation5 + $0x158] sm:$0xff]  ;;  %v143_v57 = vld [vmem:[#allocation5 + $0xd0] sm:$0xff]  ;;  %v146_v58 = vld [vmem:[#allocation5 + $0xe8] sm:$0xff]  ;;  %v2297_v59 = vpack.c.bf16 %v156_v53, %v153_v52 }
  0x8f   :  { %2284 = vmatprep.subr.bf16.mxu0 %v2283_v22  ;;  %2308 = vmatpush3.bf16.msra.mxu1 %v2307_v38  ;;  %v2299_v60 = vpack.c.bf16 %v163_v55, %v160_v54  ;;  %v159_v61 = vld [vmem:[#allocation5 + $0x150] sm:$0xff]  ;;  %v162_v62 = vld [vmem:[#allocation5 + $0x168] sm:$0xff]  ;;  %v2316_v63 = vpack.c.bf16 %v146_v58, %v143_v57  ;;  %v149_v4 = vld [vmem:[#allocation5 + $0x100] sm:$0xff] }
  0x90   :  { %2309 = vmatprep.subr.bf16.mxu1 %v3068_v1  ;;  %v324_v2 = vld [vmem:[#allocation8 + $0x8] sm:$0xff]  ;;  %v327_v3 = vld [vmem:[#allocation8 + $0x20] sm:$0xff]  ;;  %v152_v5 = vld [vmem:[#allocation5 + $0x118] sm:$0xff]  ;;  %v2301_v6 = vpack.c.bf16 %v162_v62, %v159_v61 }
  0x91   :  { %v2327_v7 = vpack.c.bf16 %v327_v3, %v324_v2  ;;  %v323_v8 = vld [vmem:[#allocation8] sm:$0xff]  ;;  %v326_v9 = vld [vmem:[#allocation8 + $0x18] sm:$0xff]  ;;  %v2319_v10 = vpack.c.bf16 %v152_v5, %v149_v4  ;;  %v333_v12 = vld [vmem:[#allocation8 + $0x50] sm:$0xff] }
  0x92   :  { %2286 = vmatpush1.bf16.msra.mxu0 %v2285_v30  ;;  %v330_v11 = vld [vmem:[#allocation8 + $0x38] sm:$0xff]  ;;  %v155_v13 = vld [vmem:[#allocation5 + $0x130] sm:$0xff]  ;;  %v158_v14 = vld [vmem:[#allocation5 + $0x148] sm:$0xff]  ;;  %v2329_v16 = vpack.c.bf16 %v326_v9, %v323_v8 }
  0x93   :  { %2288 = vmatprep.subr.bf16.mxu0 %v2287_v33  ;;  %2311 = vmatpush3.bf16.msra.mxu1 %v2310_v47  ;;  %v116_v15 = vld [vmem:[#allocation2] sm:$0x3]  ;;  %v2331_v17 = vpack.c.bf16 %v333_v12, %v330_v11  ;;  %v329_v18 = vld [vmem:[#allocation8 + $0x30] sm:$0xff]  ;;  %v332_v19 = vld [vmem:[#allocation8 + $0x48] sm:$0xff]  ;;  %v2322_v20 = vpack.c.bf16 %v158_v14, %v155_v13 }
  0x94   :  { %2312 = vmatprep.subr.bf16.mxu1 %v3068_v1  ;;  %v336_v21 = vld [vmem:[#allocation8 + $0x68] sm:$0xff]  ;;  %v339_v22 = vld [vmem:[#allocation8 + $0x80] sm:$0xff]  ;;  %v164_v24 = vld [vmem:[#allocation5 + $0x178] sm:$0xff]  ;;  %v2333_v25 = vpack.c.bf16 %v332_v19, %v329_v18 }
  0x95   :  { %v161_v23 = vld [vmem:[#allocation5 + $0x160] sm:$0xff]  ;;  %v373_v26 = vld [vmem:[#allocation8 + $0x190] sm:$0xff]  ;;  %v376_v27 = vld [vmem:[#allocation8 + $0x1a8] sm:$0xff]  ;;  %v2335_v28 = vpack.c.bf16 %v339_v22, %v336_v21 }
  0x96   :  { %2290 = vmatpush1.bf16.msra.mxu0 %v2289_v41  ;;  %v335_v29 = vld [vmem:[#allocation8 + $0x60] sm:$0xff]  ;;  %v338_v30 = vld [vmem:[#allocation8 + $0x78] sm:$0xff]  ;;  %v2325_v31 = vpack.c.bf16 %v164_v24, %v161_v23  ;;  %v345_v33 = vld [vmem:[#allocation8 + $0xb0] sm:$0xff]  ;;  %v2423_v34 = vpack.c.bf16 %v376_v27, %v373_v26 }
  0x97   :  { %2292 = vmatprep.subr.bf16.mxu0 %v2291_v42  ;;  %2314 = vmatpush3.bf16.msra.mxu1 %v2313_v56  ;;  %v342_v32 = vld [vmem:[#allocation8 + $0x98] sm:$0xff]  ;;  %v325_v35 = vld [vmem:[#allocation8 + $0x10] sm:$0xff]  ;;  %v328_v36 = vld [vmem:[#allocation8 + $0x28] sm:$0xff]  ;;  %v2337_v37 = vpack.c.bf16 %v338_v30, %v335_v29 }
  0x98   :  { %2315 = vmatprep.subr.bf16.mxu1 %v3068_v1  ;;  %v379_v38 = vld [vmem:[#allocation8 + $0x1c0] sm:$0xff]  ;;  %v382_v39 = vld [vmem:[#allocation8 + $0x1d8] sm:$0xff]  ;;  %v2339_v40 = vpack.c.bf16 %v345_v33, %v342_v32  ;;  %v341_v41 = vld [vmem:[#allocation8 + $0x90] sm:$0xff]  ;;  %v2425_v45 = vpack.c.bf16 %v328_v36, %v325_v35 }
  0x99   :  { %v344_v42 = vld [vmem:[#allocation8 + $0xa8] sm:$0xff]  ;;  %v351_v44 = vld [vmem:[#allocation8 + $0xe0] sm:$0xff]  ;;  %v2427_v46 = vpack.c.bf16 %v382_v39, %v379_v38  ;;  %v334_v48 = vld [vmem:[#allocation8 + $0x58] sm:$0xff] }
  0x9a   :  { %2294 = vmatpush1.bf16.msra.mxu0 %v2293_v50  ;;  %v348_v43 = vld [vmem:[#allocation8 + $0xc8] sm:$0xff]  ;;  %v331_v47 = vld [vmem:[#allocation8 + $0x40] sm:$0xff]  ;;  %v2341_v49 = vpack.c.bf16 %v344_v42, %v341_v41  ;;  %v385_v50 = vld [vmem:[#allocation8 + $0x1f0] sm:$0xff] }
  0x9b   :  { %2296 = vmatprep.subr.bf16.mxu0 %v2295_v51  ;;  %2317 = vmatpush3.bf16.msra.mxu1 %v2316_v63  ;;  %v388_v51 = vld [vmem:[#allocation8 + $0x208] sm:$0xff]  ;;  %v2343_v52 = vpack.c.bf16 %v351_v44, %v348_v43  ;;  %v347_v53 = vld [vmem:[#allocation8 + $0xc0] sm:$0xff]  ;;  %v350_v54 = vld [vmem:[#allocation8 + $0xd8] sm:$0xff]  ;;  %v2429_v57 = vpack.c.bf16 %v334_v48, %v331_v47 }
  0x9c   :  { %2318 = vmatprep.subr.bf16.mxu1 %v3068_v1  ;;  %v354_v55 = vld [vmem:[#allocation8 + $0xf8] sm:$0xff]  ;;  %v357_v56 = vld [vmem:[#allocation8 + $0x110] sm:$0xff]  ;;  %v2431_v58 = vpack.c.bf16 %v388_v51, %v385_v50  ;;  %v2345_v61 = vpack.c.bf16 %v350_v54, %v347_v53  ;;  %v391_v62 = vld [vmem:[#allocation8 + $0x220] sm:$0xff] }
  0x9d   :  { %v394_v63 = vld [vmem:[#allocation8 + $0x238] sm:$0xff]  ;;  %v2347_v2 = vpack.c.bf16 %v357_v56, %v354_v55  ;;  %v353_v3 = vld [vmem:[#allocation8 + $0xf0] sm:$0xff]  ;;  %v356_v4 = vld [vmem:[#allocation8 + $0x108] sm:$0xff] }
  0x9e   :  { %2298 = vmatpush1.bf16.msra.mxu0 %v2297_v59  ;;  %v337_v59 = vld [vmem:[#allocation8 + $0x70] sm:$0xff]  ;;  %v360_v5 = vld [vmem:[#allocation8 + $0x128] sm:$0xff]  ;;  %v2435_v8 = vpack.c.bf16 %v394_v63, %v391_v62  ;;  %v343_v9 = vld [vmem:[#allocation8 + $0xa0] sm:$0xff]  ;;  %v2349_v11 = vpack.c.bf16 %v356_v4, %v353_v3 }
  0x9f   :  { %2300 = vmatprep.subr.bf16.mxu0 %v2299_v60  ;;  %2320 = vmatpush3.bf16.msra.mxu1 %v2319_v10  ;;  %v340_v60 = vld [vmem:[#allocation8 + $0x88] sm:$0xff]  ;;  %v346_v10 = vld [vmem:[#allocation8 + $0xb8] sm:$0xff]  ;;  %v397_v12 = vld [vmem:[#allocation8 + $0x250] sm:$0xff] }
  0xa0   :  { %2321 = vmatprep.subr.bf16.mxu1 %v3068_v1  ;;  %v400_v13 = vld [vmem:[#allocation8 + $0x268] sm:$0xff]  ;;  %v369_v18 = vld [vmem:[#allocation8 + $0x170] sm:$0xff]  ;;  %v2437_v19 = vpack.c.bf16 %v346_v10, %v343_v9  ;;  %v403_v24 = vld [vmem:[#allocation8 + $0x280] sm:$0xff] }
  0xa1   :  { %v349_v21 = vld [vmem:[#allocation8 + $0xd0] sm:$0xff]  ;;  %v352_v22 = vld [vmem:[#allocation8 + $0xe8] sm:$0xff]  ;;  %v375_v30 = vld [vmem:[#allocation8 + $0x1a0] sm:$0xff] }
  0xa2   :  { %2302 = vmatpush1.bf16.msra.mxu0 %v2301_v6  ;;  %v363_v6 = vld [vmem:[#allocation8 + $0x140] sm:$0xff]  ;;  %v365_v27 = vld [vmem:[#allocation8 + $0x150] sm:$0xff]  ;;  %v372_v29 = vld [vmem:[#allocation8 + $0x188] sm:$0xff] }
  0xa3   :  { %2328 = vmatprep.subr.bf16.mxu0 %v2327_v7  ;;  %2323 = vmatpush3.bf16.msra.mxu1 %v2322_v20  ;;  %v2433_v7 = vpack.c.bf16 %v340_v60, %v337_v59  ;;  %v2351_v14 = vpack.c.bf16 %v363_v6, %v360_v5  ;;  %v2439_v20 = vpack.c.bf16 %v400_v13, %v397_v12  ;;  %v355_v33 = vld [vmem:[#allocation8 + $0x100] sm:$0xff]  ;;  %v409_v36 = vld [vmem:[#allocation8 + $0x2b0] sm:$0xff]  ;;  %v378_v41 = vld [vmem:[#allocation8 + $0x1b8] sm:$0xff] }
  0xa4   :  { %2324 = vmatprep.subr.bf16.mxu1 %v3068_v1  ;;  %v2359_v38 = vpack.c.bf16 %v375_v30, %v372_v29  ;;  %v371_v39 = vld [vmem:[#allocation8 + $0x180] sm:$0xff]  ;;  %v381_v42 = vld [vmem:[#allocation8 + $0x1d0] sm:$0xff]  ;;  %v380_v50 = vld [vmem:[#allocation8 + $0x1c8] sm:$0xff] }
  0xa5   :  { %247 = vmatmul.mubr.f32.vlgmr.msra.gmra.mrb[0].mxu0 %v116_v15  ;;  %v2363_v48 = vpack.c.bf16 %v381_v42, %v378_v41  ;;  %v384_v51 = vld [vmem:[#allocation8 + $0x1e8] sm:$0xff]  ;;  %v383_v56 = vld [vmem:[#allocation8 + $0x1e0] sm:$0xff]  ;;  %v393_v59 = vld [vmem:[#allocation8 + $0x230] sm:$0xff] }
  0xa6   :  { %2330 = vmatpush1.bf16.msra.mxu0 %v2329_v16  ;;  %v362_v16 = vld [vmem:[#allocation8 + $0x138] sm:$0xff]  ;;  %v389_v62 = vld [vmem:[#allocation8 + $0x210] sm:$0xff]  ;;  %v392_v63 = vld [vmem:[#allocation8 + $0x228] sm:$0xff] }
  0xa7   :  { %2332 = vmatprep.subr.bf16.mxu0 %v2331_v17  ;;  %2326 = vmatpush3.bf16.msra.mxu1 %v2325_v31  ;;  %v366_v17 = vld [vmem:[#allocation8 + $0x158] sm:$0xff]  ;;  %v2441_v31 = vpack.c.bf16 %v352_v22, %v349_v21  ;;  %v399_v3 = vld [vmem:[#allocation8 + $0x260] sm:$0xff]  ;;  %v2373_v4 = vpack.c.bf16 %v392_v63, %v389_v62  ;;  %v405_v9 = vld [vmem:[#allocation8 + $0x290] sm:$0xff] }
  0xa8   :  { %2424 = vmatprep.subr.bf16.mxu1 %v2423_v34  ;;  %v2355_v26 = vpack.c.bf16 %v369_v18, %v366_v17  ;;  %v358_v34 = vld [vmem:[#allocation8 + $0x118] sm:$0xff]  ;;  %v395_v6 = vld [vmem:[#allocation8 + $0x240] sm:$0xff]  ;;  %v401_v12 = vld [vmem:[#allocation8 + $0x270] sm:$0xff] }
  0xa9   :  { %v2445_v43 = vpack.c.bf16 %v358_v34, %v355_v33  ;;  %v404_v13 = vld [vmem:[#allocation8 + $0x288] sm:$0xff]  ;;  %v407_v18 = vld [vmem:[#allocation8 + $0x2a0] sm:$0xff]  ;;  %v414_v21 = vld [vmem:[#allocation8 + $0x2d8] sm:$0xff] }
  0xaa   :  { %2334 = vmatpush1.bf16.msra.mxu0 %v2333_v25  ;;  %2129 = vmatmul.mubr.f32.vlgmr.msra.gmra.mrb[0].mxu1 %v116_v15  ;;  %v359_v15 = vld [vmem:[#allocation8 + $0x120] sm:$0xff]  ;;  %v406_v25 = vld [vmem:[#allocation8 + $0x298] sm:$0xff]  ;;  %v417_v22 = vld [vmem:[#allocation8 + $0x2f0] sm:$0xff] }
  0xab   :  { %2336 = vmatprep.subr.bf16.mxu0 %v2335_v28  ;;  %2426 = vmatpush3.bf16.msra.mxu1 %v2425_v45  ;;  %v2353_v23 = vpack.c.bf16 %v362_v16, %v359_v15  ;;  %v368_v28 = vld [vmem:[#allocation8 + $0x168] sm:$0xff]  ;;  %v2443_v32 = vpack.c.bf16 %v406_v25, %v403_v24  ;;  %v361_v45 = vld [vmem:[#allocation8 + $0x130] sm:$0xff]  ;;  %v411_v15 = vld [vmem:[#allocation8 + $0x2c0] sm:$0xff]  ;;  %v2381_v16 = vpack.c.bf16 %v404_v13, %v401_v12 }
  0xac   :  { %2428 = vmatprep.subr.bf16.mxu1 %v2427_v46  ;;  %v2357_v35 = vpack.c.bf16 %v368_v28, %v365_v27  ;;  %v364_v46 = vld [vmem:[#allocation8 + $0x148] sm:$0xff]  ;;  %v2387_v24 = vpack.c.bf16 %v417_v22, %v414_v21  ;;  %v418_v25 = vld [vmem:[#allocation8 + $0x2f8] sm:$0xff]  ;;  %v367_v30 = vld [vmem:[#allocation8 + $0x160] sm:$0xff] }
  0xad   :  { %v2449_v53 = vpack.c.bf16 %v364_v46, %v361_v45  ;;  %v416_v27 = vld [vmem:[#allocation8 + $0x2e8] sm:$0xff]  ;;  %v423_v34 = vld [vmem:[#allocation8 + $0x320] sm:$0xff]  ;;  %v421_v45 = vld [vmem:[#allocation8 + $0x310] sm:$0xff] }
  0xae   :  { %2338 = vmatpush1.bf16.msra.mxu0 %v2337_v37  ;;  %v412_v37 = vld [vmem:[#allocation8 + $0x2c8] sm:$0xff]  ;;  %v419_v42 = vld [vmem:[#allocation8 + $0x300] sm:$0xff] }
  0xaf   :  { %2340 = vmatprep.subr.bf16.mxu0 %v2339_v40  ;;  %2430 = vmatpush3.bf16.msra.mxu1 %v2429_v57  ;;  %v374_v40 = vld [vmem:[#allocation8 + $0x198] sm:$0xff]  ;;  %v2447_v44 = vpack.c.bf16 %v412_v37, %v409_v36  ;;  %v420_v33 = vld [vmem:[#allocation8 + $0x308] sm:$0xff]  ;;  %v167_v36 = vlaneseq  ;;  %v443_v22 = vld [vmem:[#allocation8 + $0x3c0] sm:$0xff] }
  0xb0   :  { %2432 = vmatprep.subr.bf16.mxu1 %v2431_v58  ;;  %v2361_v47 = vpack.c.bf16 %v374_v40, %v371_v39  ;;  %v386_v57 = vld [vmem:[#allocation8 + $0x1f8] sm:$0xff]  ;;  %v424_v46 = vld [vmem:[#allocation8 + $0x328] sm:$0xff] }
  0xb1   :  { %v390_v58 = vld [vmem:[#allocation8 + $0x218] sm:$0xff]  ;;  %v2369_v60 = vpack.c.bf16 %v386_v57, %v383_v56  ;;  %v3207_v37 = vshrl.u32 %v167_v36, 7  ;;  %v428_v57 = vld [vmem:[#allocation8 + $0x348] sm:$0xff] }
  0xb2   :  { %2342 = vmatpush1.bf16.msra.mxu0 %v2341_v49  ;;  %v377_v49 = vld [vmem:[#allocation8 + $0x1b0] sm:$0xff]  ;;  %v3212_v39 = vld [vmem:[#allocation7] sm:$0x7]  ;;  %v456_v36 = vld [vmem:[#allocation8 + $0x428] sm:$0xff] }
  0xb3   :  { %2344 = vmatprep.subr.bf16.mxu0 %v2343_v52  ;;  %2434 = vmatpush3.bf16.msra.mxu1 %v2433_v7  ;;  %v387_v52 = vld [vmem:[#allocation8 + $0x200] sm:$0xff]  ;;  %v2365_v54 = vpack.c.bf16 %v380_v50, %v377_v49  ;;  %v398_v7 = vld [vmem:[#allocation8 + $0x258] sm:$0xff]  ;;  %v3215_v40 = vsub.s32 0, %v3207_v37  ;;  %v429_v49 = vld [vmem:[#allocation8 + $0x350] sm:$0xff] }
  0xb4   :  { %2436 = vmatprep.subr.bf16.mxu1 %v2435_v8  ;;  %v2367_v55 = vpack.c.bf16 %v387_v52, %v384_v51  ;;  %v402_v8 = vld [vmem:[#allocation8 + $0x278] sm:$0xff]  ;;  %v2377_v10 = vpack.c.bf16 %v398_v7, %v395_v6  ;;  %v436_v6 = vld [vmem:[#allocation8 + $0x388] sm:$0xff] }
  0xb5   :  { %v438_v7 = vld [vmem:[#allocation8 + $0x398] sm:$0xff] }
  0xb6   :  { %2346 = vmatpush1.bf16.msra.mxu0 %v2345_v61  ;;  %v2371_v61 = vpack.c.bf16 %v393_v59, %v390_v58  ;;  %v427_v58 = vld [vmem:[#allocation8 + $0x340] sm:$0xff]  ;;  %v430_v59 = vld [vmem:[#allocation8 + $0x358] sm:$0xff] }
  0xb7   :  { %2348 = vmatprep.subr.bf16.mxu0 %v2347_v2  ;;  %2438 = vmatpush3.bf16.msra.mxu1 %v2437_v19  ;;  %v396_v2 = vld [vmem:[#allocation8 + $0x248] sm:$0xff]  ;;  %v410_v19 = vld [vmem:[#allocation8 + $0x2b8] sm:$0xff]  ;;  %v2459_v63 = vpack.c.bf16 %v430_v59, %v427_v58 }
  0xb8   :  { %2440 = vmatprep.subr.bf16.mxu1 %v2439_v20  ;;  %v2375_v5 = vpack.c.bf16 %v399_v3, %v396_v2  ;;  %v2385_v20 = vpack.c.bf16 %v410_v19, %v407_v18  ;;  %v431_v2 = vld [vmem:[#allocation8 + $0x360] sm:$0xff]  ;;  %v444_v18 = vld [vmem:[#allocation8 + $0x3c8] sm:$0xff]  ;;  %v466_v58 = vld [vmem:[#allocation8 + $0x478] sm:$0xff] }
  0xb9   :  { %v447_v19 = vld [vmem:[#allocation8 + $0x3e0] sm:$0xff]  ;;  %v768_v59 = vld [vmem:[#allocation8 + $0x488] sm:$0xff] }
  0xba   :  { %2350 = vmatpush1.bf16.msra.mxu0 %v2349_v11  ;;  %v2379_v11 = vpack.c.bf16 %v405_v9, %v402_v8  ;;  %v441_v8 = vld [vmem:[#allocation8 + $0x3b0] sm:$0xff] }
  0xbb   :  { %2352 = vmatprep.subr.bf16.mxu0 %v2351_v14  ;;  %2442 = vmatpush3.bf16.msra.mxu1 %v2441_v31  ;;  %v408_v14 = vld [vmem:[#allocation8 + $0x2a8] sm:$0xff]  ;;  %v370_v31 = vld [vmem:[#allocation8 + $0x178] sm:$0xff]  ;;  %v2403_v13 = vpack.c.bf16 %v441_v8, %v438_v7 }
  0xbc   :  { %2444 = vmatprep.subr.bf16.mxu1 %v2443_v32  ;;  %v2383_v17 = vpack.c.bf16 %v411_v15, %v408_v14  ;;  %v2453_v32 = vpack.c.bf16 %v370_v31, %v367_v30  ;;  %v440_v14 = vld [vmem:[#allocation8 + $0x3a8] sm:$0xff]  ;;  %v439_v15 = vld [vmem:[#allocation8 + $0x3a0] sm:$0xff]  ;;  %v449_v31 = vld [vmem:[#allocation8 + $0x3f0] sm:$0xff] }
  0xbe   :  { %2354 = vmatpush1.bf16.msra.mxu0 %v2353_v23  ;;  %v415_v23 = vld [vmem:[#allocation8 + $0x2e0] sm:$0xff] }
  0xbf   :  { %2356 = vmatprep.subr.bf16.mxu0 %v2355_v26  ;;  %2446 = vmatpush3.bf16.msra.mxu1 %v2445_v43  ;;  %v413_v26 = vld [vmem:[#allocation8 + $0x2d0] sm:$0xff]  ;;  %v2451_v28 = vpack.c.bf16 %v418_v25, %v415_v23  ;;  %v170_v43 = vrot.slane %v3212_v39, %v3215_v40  ;;  %v2407_v23 = vpack.c.bf16 %v447_v19, %v444_v18 }
  0xc0   :  { %2448 = vmatprep.subr.bf16.mxu1 %v2447_v44  ;;  %v2389_v29 = vpack.c.bf16 %v416_v27, %v413_v26  ;;  %v422_v44 = vld [vmem:[#allocation8 + $0x318] sm:$0xff]  ;;  %v445_v25 = vld [vmem:[#allocation8 + $0x3d0] sm:$0xff]  ;;  %v448_v26 = vld [vmem:[#allocation8 + $0x3e8] sm:$0xff] }
  0xc1   :  { %v2393_v52 = vpack.c.bf16 %v422_v44, %v419_v42  ;;  %v450_v27 = vld [vmem:[#allocation8 + $0x3f8] sm:$0xff]  ;;  %v2468_v30 = vpack.c.bf16 %v448_v26, %v445_v25  ;;  %v455_v44 = vld [vmem:[#allocation8 + $0x420] sm:$0xff]  ;;  %v789_v18 = vld [vmem:[#allocation8 + $0x530] sm:$0xff] }
  0xc2   :  { %2358 = vmatpush1.bf16.msra.mxu0 %v2357_v35  ;;  %v2391_v35 = vpack.c.bf16 %v423_v34, %v420_v33  ;;  %v452_v33 = vld [vmem:[#allocation8 + $0x408] sm:$0xff]  ;;  %v451_v34 = vld [vmem:[#allocation8 + $0x400] sm:$0xff] }
  0xc3   :  { %2360 = vmatprep.subr.bf16.mxu0 %v2359_v38  ;;  %2450 = vmatpush3.bf16.msra.mxu1 %v2449_v53  ;;  %v3210_v38 = vsub.s32 1, %v3207_v37  ;;  %v2456_v53 = vpack.c.bf16 %v424_v46, %v421_v45  ;;  %v2413_v42 = vpack.c.bf16 %v452_v33, %v449_v31  ;;  %v458_v46 = vld [vmem:[#allocation8 + $0x438] sm:$0xff]  ;;  %v791_v26 = vld [vmem:[#allocation8 + $0x540] sm:$0xff]  ;;  %v800_v33 = vld [vmem:[#allocation8 + $0x588] sm:$0xff] }
  0xc4   :  { %2452 = vmatprep.subr.bf16.mxu1 %v2451_v28  ;;  %v453_v28 = vld [vmem:[#allocation8 + $0x410] sm:$0xff] }
  0xc5   :  { %v174_v41 = vrot.slane %v3212_v39, %v3210_v38 }
  0xc6   :  { %2362 = vmatpush1.bf16.msra.mxu0 %v2361_v47 }
  0xc7   :  { %2364 = vmatprep.subr.bf16.mxu0 %v2363_v48  ;;  %2454 = vmatpush3.bf16.msra.mxu1 %v2453_v32  ;;  %v426_v48 = vld [vmem:[#allocation8 + $0x338] sm:$0xff]  ;;  %v2411_v32 = vpack.c.bf16 %v453_v28, %v450_v27 }
  0xc8   :  { %2455 = vmatprep.subr.bf16.mxu1 %v3068_v1  ;;  %v2395_v56 = vpack.c.bf16 %v429_v49, %v426_v48  ;;  %v460_v48 = vld [vmem:[#allocation8 + $0x448] sm:$0xff]  ;;  %v462_v49 = vld [vmem:[#allocation8 + $0x458] sm:$0xff] }
  0xc9   :  { %v794_v27 = vld [vmem:[#allocation8 + $0x558] sm:$0xff] }
  0xca   :  { %2366 = vmatpush1.bf16.msra.mxu0 %v2365_v54  ;;  %v425_v54 = vld [vmem:[#allocation8 + $0x330] sm:$0xff]  ;;  %v798_v28 = vld [vmem:[#allocation8 + $0x578] sm:$0xff] }
  0xcb   :  { %2368 = vmatprep.subr.bf16.mxu0 %v2367_v55  ;;  %v2397_v62 = vpack.c.bf16 %v428_v57, %v425_v54  ;;  %v461_v54 = vld [vmem:[#allocation8 + $0x450] sm:$0xff]  ;;  %v463_v57 = vld [vmem:[#allocation8 + $0x460] sm:$0xff] }
  0xce   :  { %2370 = vmatpush1.bf16.msra.mxu0 %v2369_v60  ;;  %v432_v60 = vld [vmem:[#allocation8 + $0x368] sm:$0xff] }
  0xcf   :  { %2372 = vmatprep.subr.bf16.mxu0 %v2371_v61  ;;  %v435_v61 = vld [vmem:[#allocation8 + $0x380] sm:$0xff] }
  0xd0   :  { %v2399_v3 = vpack.c.bf16 %v435_v61, %v432_v60  ;;  %v771_v60 = vld [vmem:[#allocation8 + $0x4a0] sm:$0xff] }
  0xd2   :  { %2374 = vmatpush1.bf16.msra.mxu0 %v2373_v4  ;;  %v434_v4 = vld [vmem:[#allocation8 + $0x378] sm:$0xff] }
  0xd3   :  { %2376 = vmatprep.subr.bf16.mxu0 %v2375_v5  ;;  %v433_v5 = vld [vmem:[#allocation8 + $0x370] sm:$0xff]  ;;  %v2401_v9 = vpack.c.bf16 %v434_v4, %v431_v2  ;;  %v767_v2 = vld [vmem:[#allocation8 + $0x480] sm:$0xff]  ;;  %v774_v4 = vld [vmem:[#allocation8 + $0x4b8] sm:$0xff] }
  0xd6   :  { %2378 = vmatpush1.bf16.msra.mxu0 %v2377_v10  ;;  %v2462_v10 = vpack.c.bf16 %v436_v6, %v433_v5  ;;  %v777_v5 = vld [vmem:[#allocation8 + $0x4d0] sm:$0xff] }
  0xd7   :  { %2380 = vmatprep.subr.bf16.mxu0 %v2379_v11  ;;  %v437_v11 = vld [vmem:[#allocation8 + $0x390] sm:$0xff]  ;;  %v2483_v8 = vpack.c.bf16 %v777_v5, %v774_v4  ;;  %v826_v4 = vld [vmem:[#allocation8 + $0x658] sm:$0xff] }
  0xda   :  { %2382 = vmatpush1.bf16.msra.mxu0 %v2381_v16  ;;  %v442_v16 = vld [vmem:[#allocation8 + $0x3b8] sm:$0xff] }
  0xdb   :  { %2384 = vmatprep.subr.bf16.mxu0 %v2383_v17  ;;  %v2465_v21 = vpack.c.bf16 %v442_v16, %v439_v15  ;;  %v779_v15 = vld [vmem:[#allocation8 + $0x4e0] sm:$0xff]  ;;  %v782_v16 = vld [vmem:[#allocation8 + $0x4f8] sm:$0xff] }
  0xde   :  { %2386 = vmatpush1.bf16.msra.mxu0 %v2385_v20  ;;  %v2405_v20 = vpack.c.bf16 %v440_v14, %v437_v11  ;;  %v783_v11 = vld [vmem:[#allocation8 + $0x500] sm:$0xff] }
  0xdf   :  { %2388 = vmatprep.subr.bf16.mxu0 %v2387_v24  ;;  %v446_v24 = vld [vmem:[#allocation8 + $0x3d8] sm:$0xff] }
  0xe2   :  { %2390 = vmatpush1.bf16.msra.mxu0 %v2389_v29  ;;  %v2409_v29 = vpack.c.bf16 %v446_v24, %v443_v22  ;;  %v792_v22 = vld [vmem:[#allocation8 + $0x548] sm:$0xff] }
  0xe3   :  { %2392 = vmatprep.subr.bf16.mxu0 %v2391_v35  ;;  %v454_v35 = vld [vmem:[#allocation8 + $0x418] sm:$0xff] }
 0x178   :  { %v248_v47 = vpop.f32.mrb[0].mxu0 }
 0x179   :  { %v250_v50 = vpop.f32.mrb[1].mxu0  ;;  %v249_v55 = vadd.f32 %v248_v47, %v170_v43  ;;  %v2471_v43 = vpack.c.bf16 %v454_v35, %v451_v34  ;;  %v457_v47 = vld [vmem:[#allocation8 + $0x430] sm:$0xff]  ;;  %v804_v34 = vld [vmem:[#allocation8 + $0x5a8] sm:$0xff]  ;;  %v807_v35 = vld [vmem:[#allocation8 + $0x5c0] sm:$0xff] }
 0x17a   :  { %v251_v51 = vadd.f32 %v250_v50, %v174_v41  ;;  %v459_v41 = vld [vmem:[#allocation8 + $0x440] sm:$0xff]  ;;  %v465_v50 = vld [vmem:[#allocation8 + $0x470] sm:$0xff] }
 0x17b   :  { %v2415_v45 = vpack.c.bf16 %v459_v41, %v456_v36  ;;  %v2503_v41 = vpack.c.bf16 %v807_v35, %v804_v34  ;;  %v840_v34 = vld [vmem:[#allocation8 + $0x6c8] sm:$0xff]  ;;  %v843_v35 = vld [vmem:[#allocation8 + $0x6e0] sm:$0xff] }
 0x17c   :  { %548 = vmatprep.mubr.f32.mxu0 %v251_v51  ;;  %690 = vmatprep.mubr.f32.mxu1 %v251_v51  ;;  %v3232_v51 = vsub.s32 2, %v3207_v37 }
 0x17d   :  { %549 = vmatmul.mubr.f32.vlgmr.msra.gmra.mrb[2].mxu0 %v249_v55  ;;  %691 = vmatmul.mubr.f32.vlgmr.msra.gmra.mrb[2].mxu1 %v249_v55  ;;  %v3225_v12 = vpop.f32.mrb[0].mxu1  ;;  %v2419_v55 = vpack.c.bf16 %v465_v50, %v462_v49  ;;  %v812_v49 = vld [vmem:[#allocation8 + $0x5e8] sm:$0xff] }
 0x17e   :  { %2394 = vmatpush1.bf16.msra.mxu0 %v2393_v52  ;;  %2457 = vmatpush3.bf16.msra.mxu1 %v2456_v53  ;;  %v2130_v17 = vpop.f32.mrb[1].mxu1  ;;  %v2417_v52 = vpack.c.bf16 %v458_v46, %v455_v44  ;;  %v2474_v53 = vpack.c.bf16 %v460_v48, %v457_v47  ;;  %v178_v61 = vrot.slane %v3212_v39, %v3232_v51  ;;  %v773_v39 = vld [vmem:[#allocation8 + $0x4b0] sm:$0xff]  ;;  %v810_v44 = vld [vmem:[#allocation8 + $0x5d8] sm:$0xff] }
 0x17f   :  { %2396 = vmatprep.subr.bf16.mxu0 %v2395_v56  ;;  %2458 = vmatprep.subr.bf16.mxu1 %v3068_v1  ;;  %v464_v56 = vld [vmem:[#allocation8 + $0x468] sm:$0xff]  ;;  %v786_v17 = vld [vmem:[#allocation8 + $0x518] sm:$0xff]  ;;  %v809_v48 = vld [vmem:[#allocation8 + $0x5d0] sm:$0xff] }
 0x180   :  { %619 = vmatprep.mubr.f32.mxu0 %v3067_v0  ;;  %2163 = vmatprep.mubr.msk.f32.mxu1 %vm3069_vm0, %v3067_v0  ;;  %v2421_v37 = vpack.c.bf16 %v464_v56, %v461_v54  ;;  %v320_v6 = vadd.f32 %v3225_v12, %v178_v61  ;;  %v2489_v12 = vpack.c.bf16 %v782_v16, %v779_v15  ;;  %v817_v54 = vld [vmem:[#allocation8 + $0x610] sm:$0xff]  ;;  %v820_v56 = vld [vmem:[#allocation8 + $0x628] sm:$0xff] }
 0x181   :  { %v2491_v19 = vpack.c.bf16 %v789_v18, %v786_v17  ;;  %v2509_v50 = vpack.c.bf16 %v812_v49, %v809_v48  ;;  %v769_v61 = vld [vmem:[#allocation8 + $0x490] sm:$0xff]  ;;  %v832_v17 = vld [vmem:[#allocation8 + $0x688] sm:$0xff]  ;;  %v827_v18 = vld [vmem:[#allocation8 + $0x660] sm:$0xff] }
 0x182   :  { %2398 = vmatpush1.bf16.msra.mxu0 %v2397_v62  ;;  %2460 = vmatpush3.bf16.msra.mxu1 %v2459_v63  ;;  %v2477_v62 = vpack.c.bf16 %v466_v58, %v463_v57  ;;  %v2479_v63 = vpack.c.bf16 %v771_v60, %v768_v59  ;;  %v815_v57 = vld [vmem:[#allocation8 + $0x600] sm:$0xff]  ;;  %v818_v58 = vld [vmem:[#allocation8 + $0x618] sm:$0xff]  ;;  %v2575_v59 = vpack.c.bf16 %v820_v56, %v817_v54  ;;  %v829_v16 = vld [vmem:[#allocation8 + $0x670] sm:$0xff] }
 0x183   :  { %2400 = vmatprep.subr.bf16.mxu0 %v2399_v3  ;;  %2461 = vmatprep.subr.bf16.mxu1 %v3068_v1  ;;  %v770_v3 = vld [vmem:[#allocation8 + $0x498] sm:$0xff]  ;;  %v2513_v60 = vpack.c.bf16 %v818_v58, %v815_v57  ;;  %v796_v49 = vld [vmem:[#allocation8 + $0x568] sm:$0xff]  ;;  %v845_v58 = vld [vmem:[#allocation8 + $0x6f0] sm:$0xff] }
 0x184   :  { %v2481_v7 = vpack.c.bf16 %v770_v3, %v767_v2  ;;  %v825_v2 = vld [vmem:[#allocation8 + $0x650] sm:$0xff]  ;;  %v823_v3 = vld [vmem:[#allocation8 + $0x640] sm:$0xff]  ;;  %v850_v54 = vld [vmem:[#allocation8 + $0x718] sm:$0xff] }
 0x186   :  { %2402 = vmatpush1.bf16.msra.mxu0 %v2401_v9  ;;  %2463 = vmatpush3.bf16.msra.mxu1 %v2462_v10  ;;  %v776_v9 = vld [vmem:[#allocation8 + $0x4c8] sm:$0xff] }
 0x187   :  { %2404 = vmatprep.subr.bf16.mxu0 %v2403_v13  ;;  %2464 = vmatprep.subr.bf16.mxu1 %v3068_v1  ;;  %v780_v10 = vld [vmem:[#allocation8 + $0x4e8] sm:$0xff]  ;;  %v2485_v13 = vpack.c.bf16 %v776_v9, %v773_v39  ;;  %v775_v39 = vld [vmem:[#allocation8 + $0x4c0] sm:$0xff] }
 0x188   :  { %v2487_v14 = vpack.c.bf16 %v783_v11, %v780_v10  ;;  %v778_v10 = vld [vmem:[#allocation8 + $0x4d8] sm:$0xff]  ;;  %v828_v11 = vld [vmem:[#allocation8 + $0x668] sm:$0xff] }
 0x18a   :  { %2406 = vmatpush1.bf16.msra.mxu0 %v2405_v20  ;;  %2466 = vmatpush3.bf16.msra.mxu1 %v2465_v21  ;;  %v785_v20 = vld [vmem:[#allocation8 + $0x510] sm:$0xff]  ;;  %v788_v21 = vld [vmem:[#allocation8 + $0x528] sm:$0xff] }
 0x18b   :  { %2408 = vmatprep.subr.bf16.mxu0 %v2407_v23  ;;  %2467 = vmatprep.subr.bf16.mxu1 %v3068_v1  ;;  %v795_v23 = vld [vmem:[#allocation8 + $0x560] sm:$0xff]  ;;  %v2493_v24 = vpack.c.bf16 %v788_v21, %v785_v20  ;;  %v781_v20 = vld [vmem:[#allocation8 + $0x4f0] sm:$0xff]  ;;  %v784_v21 = vld [vmem:[#allocation8 + $0x508] sm:$0xff] }
 0x18c   :  { %v2495_v25 = vpack.c.bf16 %v795_v23, %v792_v22  ;;  %v834_v23 = vld [vmem:[#allocation8 + $0x698] sm:$0xff] }
 0x18e   :  { %2410 = vmatpush1.bf16.msra.mxu0 %v2409_v29  ;;  %2469 = vmatpush3.bf16.msra.mxu1 %v2468_v30  ;;  %v801_v29 = vld [vmem:[#allocation8 + $0x590] sm:$0xff]  ;;  %v2497_v30 = vpack.c.bf16 %v794_v27, %v791_v26  ;;  %v2585_v26 = vpack.c.bf16 %v784_v21, %v781_v20 }
 0x18f   :  { %2412 = vmatprep.subr.bf16.mxu0 %v2411_v32  ;;  %2470 = vmatprep.subr.bf16.mxu1 %v3068_v1  ;;  %v2499_v31 = vpack.c.bf16 %v801_v29, %v798_v28  ;;  %v797_v32 = vld [vmem:[#allocation8 + $0x570] sm:$0xff]  ;;  %v838_v28 = vld [vmem:[#allocation8 + $0x6b8] sm:$0xff] }
 0x190   :  { %v2501_v36 = vpack.c.bf16 %v800_v33, %v797_v32  ;;  %v833_v29 = vld [vmem:[#allocation8 + $0x690] sm:$0xff]  ;;  %v787_v32 = vld [vmem:[#allocation8 + $0x520] sm:$0xff]  ;;  %v790_v33 = vld [vmem:[#allocation8 + $0x538] sm:$0xff] }
 0x192   :  { %2414 = vmatpush1.bf16.msra.mxu0 %v2413_v42  ;;  %2472 = vmatpush3.bf16.msra.mxu1 %v2471_v43  ;;  %v803_v42 = vld [vmem:[#allocation8 + $0x5a0] sm:$0xff]  ;;  %v806_v43 = vld [vmem:[#allocation8 + $0x5b8] sm:$0xff] }
 0x193   :  { %2416 = vmatprep.subr.bf16.mxu0 %v2415_v45  ;;  %2473 = vmatprep.subr.bf16.mxu1 %v3068_v1  ;;  %v813_v45 = vld [vmem:[#allocation8 + $0x5f0] sm:$0xff]  ;;  %v2505_v46 = vpack.c.bf16 %v806_v43, %v803_v42  ;;  %v2589_v43 = vpack.c.bf16 %v790_v33, %v787_v32 }
 0x194   :  { %v2507_v47 = vpack.c.bf16 %v813_v45, %v810_v44  ;;  %v2527_v44 = vpack.c.bf16 %v843_v35, %v840_v34  ;;  %v839_v45 = vld [vmem:[#allocation8 + $0x6c0] sm:$0xff] }
 0x195   :  { %v863_v34 = vld [vmem:[#allocation8 + $0x780] sm:$0xff] }
 0x196   :  { %2418 = vmatpush1.bf16.msra.mxu0 %v2417_v52  ;;  %2475 = vmatpush3.bf16.msra.mxu1 %v2474_v53  ;;  %v816_v52 = vld [vmem:[#allocation8 + $0x608] sm:$0xff]  ;;  %v819_v53 = vld [vmem:[#allocation8 + $0x620] sm:$0xff] }
 0x197   :  { %2420 = vmatprep.subr.bf16.mxu0 %v2419_v55  ;;  %2476 = vmatprep.subr.bf16.mxu1 %v3068_v1  ;;  %v2511_v55 = vpack.c.bf16 %v819_v53, %v816_v52  ;;  %v849_v52 = vld [vmem:[#allocation8 + $0x710] sm:$0xff]  ;;  %v847_v53 = vld [vmem:[#allocation8 + $0x700] sm:$0xff] }
 0x19a   :  { %2422 = vmatpush1.bf16.msra.mxu0 %v2421_v37  ;;  %2478 = vmatpush3.bf16.msra.mxu1 %v2477_v62  ;;  %v772_v37 = vld [vmem:[#allocation8 + $0x4a8] sm:$0xff]  ;;  %v822_v62 = vld [vmem:[#allocation8 + $0x638] sm:$0xff] }
 0x19b   :  { %2480 = vmatprep.subr.bf16.mxu1 %v2479_v63  ;;  %v2577_v63 = vpack.c.bf16 %v772_v37, %v769_v61  ;;  %2576 = vmatprep.subr.bf16.mxu0 %v2575_v59  ;;  %v2515_v5 = vpack.c.bf16 %v825_v2, %v822_v62  ;;  %v848_v59 = vld [vmem:[#allocation8 + $0x708] sm:$0xff]  ;;  %v2595_v61 = vpack.c.bf16 %v850_v54, %v847_v53  ;;  %v802_v37 = vld [vmem:[#allocation8 + $0x598] sm:$0xff]  ;;  %v853_v2 = vld [vmem:[#allocation8 + $0x730] sm:$0xff] }
 0x19c   :  { %v852_v62 = vld [vmem:[#allocation8 + $0x728] sm:$0xff] }
 0x19d   :  { %620 = vmatmul.mubr.f32.vlgmr.msra.gmra.mrb[2].mxu0 %v320_v6  ;;  %2164 = vmatmul.mubr.f32.vlgmr.msra.gmra.mrb[4].mxu1 %v320_v6  ;;  %v2579_v6 = vpack.c.bf16 %v826_v4, %v823_v3  ;;  %v856_v3 = vld [vmem:[#allocation8 + $0x748] sm:$0xff]  ;;  %v2533_v4 = vpack.c.bf16 %v848_v59, %v845_v58  ;;  %v871_v59 = vld [vmem:[#allocation8 + $0x7c0] sm:$0xff] }
 0x19e   :  { %2482 = vmatpush1.bf16.msra.mxu1 %v2481_v7  ;;  %v821_v7 = vld [vmem:[#allocation8 + $0x630] sm:$0xff]  ;;  %2578 = vmatpush3.bf16.msra.mxu0 %v2577_v63  ;;  %v855_v63 = vld [vmem:[#allocation8 + $0x740] sm:$0xff]  ;;  %v872_v58 = vld [vmem:[#allocation8 + $0x7c8] sm:$0xff] }
 0x19f   :  { %2484 = vmatprep.subr.bf16.mxu1 %v2483_v8  ;;  %v824_v8 = vld [vmem:[#allocation8 + $0x648] sm:$0xff]  ;;  %2580 = vmatprep.subr.bf16.mxu0 %v2579_v6  ;;  %v2535_v6 = vpack.c.bf16 %v855_v63, %v852_v62 }
 0x1a0   :  { %v2517_v9 = vpack.c.bf16 %v824_v8, %v821_v7  ;;  %v851_v7 = vld [vmem:[#allocation8 + $0x720] sm:$0xff]  ;;  %v854_v8 = vld [vmem:[#allocation8 + $0x738] sm:$0xff] }
 0x1a2   :  { %2486 = vmatpush1.bf16.msra.mxu1 %v2485_v13  ;;  %v831_v13 = vld [vmem:[#allocation8 + $0x680] sm:$0xff] }
 0x1a3   :  { %2488 = vmatprep.subr.bf16.mxu1 %v2487_v14  ;;  %v2581_v14 = vpack.c.bf16 %v778_v10, %v775_v39  ;;  %v2519_v15 = vpack.c.bf16 %v831_v13, %v828_v11  ;;  %v2599_v39 = vpack.c.bf16 %v856_v3, %v853_v2  ;;  %v808_v10 = vld [vmem:[#allocation8 + $0x5c8] sm:$0xff]  ;;  %v2537_v11 = vpack.c.bf16 %v854_v8, %v851_v7  ;;  %v875_v2 = vld [vmem:[#allocation8 + $0x7e0] sm:$0xff]  ;;  %v882_v7 = vld [vmem:[#allocation8 + $0x818] sm:$0xff] }
 0x1a4   :  { %v885_v8 = vld [vmem:[#allocation8 + $0x830] sm:$0xff] }
 0x1a5   :  { %2582 = vmatpush3.bf16.msra.mxu0 %v2581_v14  ;;  %v858_v14 = vld [vmem:[#allocation8 + $0x758] sm:$0xff] }
 0x1a6   :  { %2490 = vmatpush1.bf16.msra.mxu1 %v2489_v12  ;;  %v2583_v12 = vpack.c.bf16 %v832_v17, %v829_v16  ;;  %v859_v16 = vld [vmem:[#allocation8 + $0x760] sm:$0xff] }
 0x1a7   :  { %2492 = vmatprep.subr.bf16.mxu1 %v2491_v19  ;;  %v830_v19 = vld [vmem:[#allocation8 + $0x678] sm:$0xff] }
 0x1a8   :  { %v2521_v22 = vpack.c.bf16 %v830_v19, %v827_v18  ;;  %2584 = vmatprep.subr.bf16.mxu0 %v2583_v12  ;;  %v862_v18 = vld [vmem:[#allocation8 + $0x778] sm:$0xff]  ;;  %v857_v12 = vld [vmem:[#allocation8 + $0x750] sm:$0xff]  ;;  %v860_v19 = vld [vmem:[#allocation8 + $0x768] sm:$0xff] }
 0x1a9   :  { %2586 = vmatpush3.bf16.msra.mxu0 %v2585_v26  ;;  %v2603_v20 = vpack.c.bf16 %v862_v18, %v859_v16  ;;  %v2541_v21 = vpack.c.bf16 %v860_v19, %v857_v12  ;;  %v867_v26 = vld [vmem:[#allocation8 + $0x7a0] sm:$0xff]  ;;  %v888_v16 = vld [vmem:[#allocation8 + $0x848] sm:$0xff] }
 0x1aa   :  { %2494 = vmatpush1.bf16.msra.mxu1 %v2493_v24  ;;  %v837_v24 = vld [vmem:[#allocation8 + $0x6b0] sm:$0xff]  ;;  %v887_v19 = vld [vmem:[#allocation8 + $0x840] sm:$0xff] }
 0x1ab   :  { %2496 = vmatprep.subr.bf16.mxu1 %v2495_v25  ;;  %v835_v25 = vld [vmem:[#allocation8 + $0x6a0] sm:$0xff]  ;;  %v2523_v27 = vpack.c.bf16 %v837_v24, %v834_v23  ;;  %v814_v23 = vld [vmem:[#allocation8 + $0x5f8] sm:$0xff] }
 0x1ae   :  { %2498 = vmatpush1.bf16.msra.mxu1 %v2497_v30  ;;  %v836_v30 = vld [vmem:[#allocation8 + $0x6a8] sm:$0xff] }
 0x1af   :  { %2500 = vmatprep.subr.bf16.mxu1 %v2499_v31  ;;  %v2587_v31 = vpack.c.bf16 %v838_v28, %v835_v25  ;;  %v2525_v42 = vpack.c.bf16 %v836_v30, %v833_v29  ;;  %v864_v25 = vld [vmem:[#allocation8 + $0x788] sm:$0xff] }
 0x1b1   :  { %2588 = vmatprep.subr.bf16.mxu0 %v2587_v31  ;;  %v467_v31 = vld [vmem:[#allocation10] sm:$0x7] }
 0x1b2   :  { %2502 = vmatpush1.bf16.msra.mxu1 %v2501_v36  ;;  %v841_v36 = vld [vmem:[#allocation8 + $0x6d0] sm:$0xff]  ;;  %2590 = vmatpush3.bf16.msra.mxu0 %v2589_v43  ;;  %v480_v32 = vrot.slane %v467_v31, %v3232_v51  ;;  %v476_v33 = vrot.slane %v467_v31, %v3210_v38  ;;  %v472_v35 = vrot.slane %v467_v31, %v3215_v40  ;;  %v868_v43 = vld [vmem:[#allocation8 + $0x7a8] sm:$0xff]  ;;  %v895_v31 = vld [vmem:[#allocation8 + $0x880] sm:$0xff] }
 0x1b3   :  { %2504 = vmatprep.subr.bf16.mxu1 %v2503_v41  ;;  %v844_v41 = vld [vmem:[#allocation8 + $0x6e8] sm:$0xff] }
 0x1b4   :  { %v2591_v48 = vpack.c.bf16 %v844_v41, %v841_v36  ;;  %v866_v41 = vld [vmem:[#allocation8 + $0x798] sm:$0xff] }
 0x1b5   :  { %v2545_v53 = vpack.c.bf16 %v866_v41, %v863_v34  ;;  %v903_v34 = vld [vmem:[#allocation8 + $0x8c0] sm:$0xff] }
 0x1b6   :  { %2506 = vmatpush1.bf16.msra.mxu1 %v2505_v46  ;;  %v842_v46 = vld [vmem:[#allocation8 + $0x6d8] sm:$0xff]  ;;  %2592 = vmatprep.subr.bf16.mxu0 %v2591_v48  ;;  %v899_v41 = vld [vmem:[#allocation8 + $0x8a0] sm:$0xff] }
 0x1b7   :  { %2508 = vmatprep.subr.bf16.mxu1 %v2507_v47  ;;  %v793_v47 = vld [vmem:[#allocation8 + $0x550] sm:$0xff] }
 0x1b8   :  { %v2593_v56 = vpack.c.bf16 %v796_v49, %v793_v47  ;;  %v873_v47 = vld [vmem:[#allocation8 + $0x7d0] sm:$0xff] }
 0x1ba   :  { %2510 = vmatpush1.bf16.msra.mxu1 %v2509_v50  ;;  %v846_v50 = vld [vmem:[#allocation8 + $0x6f8] sm:$0xff]  ;;  %2594 = vmatpush3.bf16.msra.mxu0 %v2593_v56 }
 0x1bb   :  { %2512 = vmatprep.subr.bf16.mxu1 %v2511_v55  ;;  %v2529_v55 = vpack.c.bf16 %v842_v46, %v839_v45  ;;  %v2531_v57 = vpack.c.bf16 %v849_v52, %v846_v50  ;;  %2596 = vmatprep.subr.bf16.mxu0 %v2595_v61  ;;  %v870_v46 = vld [vmem:[#allocation8 + $0x7b8] sm:$0xff]  ;;  %v876_v61 = vld [vmem:[#allocation8 + $0x7e8] sm:$0xff] }
 0x1be   :  { %2514 = vmatpush1.bf16.msra.mxu1 %v2513_v60  ;;  %v799_v60 = vld [vmem:[#allocation8 + $0x580] sm:$0xff] }
 0x1bf   :  { %2516 = vmatprep.subr.bf16.mxu1 %v2515_v5  ;;  %v2597_v5 = vpack.c.bf16 %v802_v37, %v799_v60  ;;  %v874_v60 = vld [vmem:[#allocation8 + $0x7d8] sm:$0xff]  ;;  %v879_v37 = vld [vmem:[#allocation8 + $0x800] sm:$0xff] }
 0x1c0   :  { %v2611_v63 = vpack.c.bf16 %v874_v60, %v871_v59  ;;  %v2551_v3 = vpack.c.bf16 %v879_v37, %v876_v61  ;;  %v1212_v37 = vld [vmem:[#allocation8 + $0x900] sm:$0xff] }
 0x1c1   :  { %2598 = vmatpush3.bf16.msra.mxu0 %v2597_v5  ;;  %v877_v5 = vld [vmem:[#allocation8 + $0x7f0] sm:$0xff] }
 0x1c2   :  { %2518 = vmatpush1.bf16.msra.mxu1 %v2517_v9  ;;  %v805_v9 = vld [vmem:[#allocation8 + $0x5b0] sm:$0xff]  ;;  %2600 = vmatprep.subr.bf16.mxu0 %v2599_v39 }
 0x1c3   :  { %2520 = vmatprep.subr.bf16.mxu1 %v2519_v15  ;;  %v2601_v13 = vpack.c.bf16 %v808_v10, %v805_v9  ;;  %v861_v15 = vld [vmem:[#allocation8 + $0x770] sm:$0xff] }
 0x1c4   :  { %v2539_v17 = vpack.c.bf16 %v861_v15, %v858_v14  ;;  %v881_v10 = vld [vmem:[#allocation8 + $0x810] sm:$0xff]  ;;  %v883_v14 = vld [vmem:[#allocation8 + $0x820] sm:$0xff]  ;;  %v886_v15 = vld [vmem:[#allocation8 + $0x838] sm:$0xff] }
 0x1c5   :  { %2602 = vmatpush3.bf16.msra.mxu0 %v2601_v13  ;;  %v884_v13 = vld [vmem:[#allocation8 + $0x828] sm:$0xff]  ;;  %v2617_v12 = vpack.c.bf16 %v886_v15, %v883_v14  ;;  %v1234_v14 = vld [vmem:[#allocation8 + $0x9b0] sm:$0xff] }
 0x1c6   :  { %2522 = vmatpush1.bf16.msra.mxu1 %v2521_v22  ;;  %v811_v22 = vld [vmem:[#allocation8 + $0x5e0] sm:$0xff]  ;;  %2604 = vmatprep.subr.bf16.mxu0 %v2603_v20  ;;  %v2557_v18 = vpack.c.bf16 %v884_v13, %v881_v10  ;;  %v1231_v13 = vld [vmem:[#allocation8 + $0x998] sm:$0xff] }
 0x1c7   :  { %2524 = vmatprep.subr.bf16.mxu1 %v2523_v27  ;;  %v2605_v24 = vpack.c.bf16 %v814_v23, %v811_v22  ;;  %v2543_v27 = vpack.c.bf16 %v867_v26, %v864_v25  ;;  %v889_v22 = vld [vmem:[#allocation8 + $0x850] sm:$0xff]  ;;  %v892_v23 = vld [vmem:[#allocation8 + $0x868] sm:$0xff]  ;;  %v1224_v10 = vld [vmem:[#allocation8 + $0x960] sm:$0xff] }
 0x1c8   :  { %v897_v25 = vld [vmem:[#allocation8 + $0x890] sm:$0xff] }
 0x1c9   :  { %2606 = vmatpush3.bf16.msra.mxu0 %v2605_v24  ;;  %v894_v24 = vld [vmem:[#allocation8 + $0x878] sm:$0xff] }
 0x1ca   :  { %2526 = vmatpush1.bf16.msra.mxu1 %v2525_v42  ;;  %2607 = vmatprep.subr.bf16.mxu0 %v3068_v1  ;;  %v865_v42 = vld [vmem:[#allocation8 + $0x790] sm:$0xff] }
 0x1cb   :  { %2528 = vmatprep.subr.bf16.mxu1 %v2527_v44  ;;  %v2608_v54 = vpack.c.bf16 %v868_v43, %v865_v42  ;;  %v902_v43 = vld [vmem:[#allocation8 + $0x8b8] sm:$0xff] }
 0x1ce   :  { %2530 = vmatpush1.bf16.msra.mxu1 %v2529_v55  ;;  %v869_v55 = vld [vmem:[#allocation8 + $0x7b0] sm:$0xff] }
 0x1cf   :  { %2532 = vmatprep.subr.bf16.mxu1 %v2531_v57  ;;  %v2547_v57 = vpack.c.bf16 %v873_v47, %v870_v46  ;;  %v2549_v62 = vpack.c.bf16 %v872_v58, %v869_v55  ;;  %v906_v46 = vld [vmem:[#allocation8 + $0x8d8] sm:$0xff]  ;;  %v909_v47 = vld [vmem:[#allocation8 + $0x8f0] sm:$0xff]  ;;  %v907_v55 = vld [vmem:[#allocation8 + $0x8e0] sm:$0xff] }
 0x1d0   :  { %v1216_v58 = vld [vmem:[#allocation8 + $0x920] sm:$0xff] }
 0x1d2   :  { %2534 = vmatpush1.bf16.msra.mxu1 %v2533_v4  ;;  %v878_v4 = vld [vmem:[#allocation8 + $0x7f8] sm:$0xff] }
 0x1d3   :  { %2536 = vmatprep.subr.bf16.mxu1 %v2535_v6  ;;  %v880_v6 = vld [vmem:[#allocation8 + $0x808] sm:$0xff]  ;;  %v2553_v39 = vpack.c.bf16 %v878_v4, %v875_v2  ;;  %v1222_v2 = vld [vmem:[#allocation8 + $0x950] sm:$0xff] }
 0x1d4   :  { %v2614_v9 = vpack.c.bf16 %v880_v6, %v877_v5  ;;  %v1218_v5 = vld [vmem:[#allocation8 + $0x930] sm:$0xff]  ;;  %v1221_v6 = vld [vmem:[#allocation8 + $0x948] sm:$0xff] }
 0x1d6   :  { %2538 = vmatpush1.bf16.msra.mxu1 %v2537_v11  ;;  %v2555_v11 = vpack.c.bf16 %v885_v8, %v882_v7  ;;  %v1225_v7 = vld [vmem:[#allocation8 + $0x968] sm:$0xff]  ;;  %v1228_v8 = vld [vmem:[#allocation8 + $0x980] sm:$0xff] }
 0x1d7   :  { %2540 = vmatprep.subr.bf16.mxu1 %v2539_v17  ;;  %v891_v17 = vld [vmem:[#allocation8 + $0x860] sm:$0xff] }
 0x1d8   :  { %v2559_v20 = vpack.c.bf16 %v891_v17, %v888_v16  ;;  %v2643_v16 = vpack.c.bf16 %v1234_v14, %v1231_v13  ;;  %v1230_v17 = vld [vmem:[#allocation8 + $0x990] sm:$0xff]  ;;  %v1277_v13 = vld [vmem:[#allocation8 + $0xb08] sm:$0xff]  ;;  %v1272_v14 = vld [vmem:[#allocation8 + $0xae0] sm:$0xff] }
 0x1da   :  { %2542 = vmatpush1.bf16.msra.mxu1 %v2541_v21  ;;  %v890_v21 = vld [vmem:[#allocation8 + $0x858] sm:$0xff] }
 0x1db   :  { %2544 = vmatprep.subr.bf16.mxu1 %v2543_v27  ;;  %v2561_v26 = vpack.c.bf16 %v890_v21, %v887_v19  ;;  %v2620_v27 = vpack.c.bf16 %v892_v23, %v889_v22  ;;  %v1240_v19 = vld [vmem:[#allocation8 + $0x9e0] sm:$0xff]  ;;  %v1239_v22 = vld [vmem:[#allocation8 + $0x9d8] sm:$0xff] }
 0x1dc   :  { %v1236_v21 = vld [vmem:[#allocation8 + $0x9c0] sm:$0xff]  ;;  %v1243_v23 = vld [vmem:[#allocation8 + $0x9f8] sm:$0xff] }
 0x250   :  { %v1920_v28 = vpop.f32.mrb[2].mxu1 }
 0x251   :  { %v1921_v29 = vpop.f32.mrb[3].mxu1 }
 0x252   :  { %v1922_v30 = vadd.f32 %v1921_v29, %v1920_v28  ;;  %v893_v28 = vld [vmem:[#allocation8 + $0x870] sm:$0xff]  ;;  %v2563_v29 = vpack.c.bf16 %v897_v25, %v894_v24  ;;  %v2649_v25 = vpack.c.bf16 %v1239_v22, %v1236_v21 }
 0x253   :  { %v1246_v24 = vld [vmem:[#allocation8 + $0xa10] sm:$0xff] }
 0x254   :  { %v693_v36 = vadd.f32 %v1922_v30, %v480_v32  ;;  %v896_v30 = vld [vmem:[#allocation8 + $0x888] sm:$0xff]  ;;  %v898_v32 = vld [vmem:[#allocation8 + $0x898] sm:$0xff] }
 0x270   :  { %v621_v44 = vpop.f32.mrb[2].mxu0  ;;  %v762_v45 = vpop.f32.mrb[4].mxu1 }
 0x271   :  { %v3243_v48 = vadd.f32 %v762_v45, %v693_v36  ;;  %v623_v49 = vpop.f32.mrb[3].mxu0  ;;  %v2165_v50 = vpop.f32.mrb[5].mxu1  ;;  %v2839_v56 = vadd.f32 %v621_v44, %v472_v35  ;;  %v2565_v35 = vpack.c.bf16 %v896_v30, %v893_v28  ;;  %v2623_v36 = vpack.c.bf16 %v898_v32, %v895_v31  ;;  %v901_v44 = vld [vmem:[#allocation8 + $0x8b0] sm:$0xff]  ;;  %v904_v45 = vld [vmem:[#allocation8 + $0x8c8] sm:$0xff]  ;;  %v1252_v30 = vld [vmem:[#allocation8 + $0xa40] sm:$0xff] }
 0x272   :  { %v2840_v52 = vadd.f32 %v623_v49, %v476_v33  ;;  %v900_v33 = vld [vmem:[#allocation8 + $0x8a8] sm:$0xff]  ;;  %v2569_v49 = vpack.c.bf16 %v902_v43, %v899_v41  ;;  %v2626_v50 = vpack.c.bf16 %v904_v45, %v901_v44  ;;  %v1254_v43 = vld [vmem:[#allocation8 + $0xa50] sm:$0xff] }
 0x273   :  { %v2567_v42 = vpack.c.bf16 %v903_v34, %v900_v33  ;;  %v1245_v28 = vld [vmem:[#allocation8 + $0xa08] sm:$0xff]  ;;  %v1248_v33 = vld [vmem:[#allocation8 + $0xa20] sm:$0xff]  ;;  %v1251_v34 = vld [vmem:[#allocation8 + $0xa38] sm:$0xff] }
 0x274   :  { %993 = vmatprep.mubr.f32.mxu1 %v2840_v52  ;;  %1135 = vmatprep.mubr.f32.mxu0 %v2840_v52  ;;  %v905_v52 = vld [vmem:[#allocation8 + $0x8d0] sm:$0xff]  ;;  %v2657_v41 = vpack.c.bf16 %v1251_v34, %v1248_v33  ;;  %v1257_v44 = vld [vmem:[#allocation8 + $0xa68] sm:$0xff] }
 0x275   :  { %994 = vmatmul.mubr.f32.vlgmr.msra.gmra.mrb[6].mxu1 %v2839_v56  ;;  %1136 = vmatmul.mubr.f32.vlgmr.msra.gmra.mrb[4].mxu0 %v2839_v56  ;;  %v910_v56 = vld [vmem:[#allocation8 + $0x8f8] sm:$0xff]  ;;  %v2661_v45 = vpack.c.bf16 %v1257_v44, %v1254_v43  ;;  %v1241_v44 = vld [vmem:[#allocation8 + $0x9e8] sm:$0xff] }
 0x276   :  { %2546 = vmatpush1.bf16.msra.mxu1 %v2545_v53  ;;  %2609 = vmatpush3.bf16.msra.mxu0 %v2608_v54  ;;  %v2571_v53 = vpack.c.bf16 %v909_v47, %v906_v46  ;;  %v908_v54 = vld [vmem:[#allocation8 + $0x8e8] sm:$0xff]  ;;  %v2629_v60 = vpack.c.bf16 %v910_v56, %v907_v55  ;;  %v1264_v47 = vld [vmem:[#allocation8 + $0xaa0] sm:$0xff] }
 0x277   :  { %2548 = vmatprep.subr.bf16.mxu1 %v2547_v57  ;;  %2610 = vmatprep.subr.bf16.mxu0 %v3068_v1  ;;  %v1213_v57 = vld [vmem:[#allocation8 + $0x908] sm:$0xff]  ;;  %v2573_v59 = vpack.c.bf16 %v908_v54, %v905_v52  ;;  %v1263_v54 = vld [vmem:[#allocation8 + $0xa98] sm:$0xff] }
 0x278   :  { %1064 = vmatprep.mubr.f32.mxu1 %v3067_v0  ;;  %2198 = vmatprep.mubr.msk.f32.mxu0 %vm3069_vm0, %v3067_v0  ;;  %v2631_v61 = vpack.c.bf16 %v1216_v58, %v1213_v57  ;;  %v1261_v46 = vld [vmem:[#allocation8 + $0xa88] sm:$0xff]  ;;  %v1214_v57 = vld [vmem:[#allocation8 + $0x910] sm:$0xff] }
 0x279   :  { %v1265_v52 = vld [vmem:[#allocation8 + $0xaa8] sm:$0xff] }
 0x27a   :  { %2550 = vmatpush1.bf16.msra.mxu1 %v2549_v62  ;;  %2612 = vmatpush3.bf16.msra.mxu0 %v2611_v63  ;;  %v1215_v62 = vld [vmem:[#allocation8 + $0x918] sm:$0xff]  ;;  %v1217_v58 = vld [vmem:[#allocation8 + $0x928] sm:$0xff] }
 0x27b   :  { %2552 = vmatprep.subr.bf16.mxu1 %v2551_v3  ;;  %2613 = vmatprep.subr.bf16.mxu0 %v3068_v1  ;;  %v1219_v63 = vld [vmem:[#allocation8 + $0x938] sm:$0xff]  ;;  %v2633_v3 = vpack.c.bf16 %v1215_v62, %v1212_v37  ;;  %v1268_v37 = vld [vmem:[#allocation8 + $0xac0] sm:$0xff] }
 0x27c   :  { %v2635_v4 = vpack.c.bf16 %v1222_v2, %v1219_v63  ;;  %v1271_v62 = vld [vmem:[#allocation8 + $0xad8] sm:$0xff] }
 0x27d   :  { %v2731_v2 = vpack.c.bf16 %v1271_v62, %v1268_v37  ;;  %v1301_v37 = vld [vmem:[#allocation8 + $0xbc8] sm:$0xff] }
 0x27e   :  { %2554 = vmatpush1.bf16.msra.mxu1 %v2553_v39  ;;  %2615 = vmatpush3.bf16.msra.mxu0 %v2614_v9  ;;  %v2637_v39 = vpack.c.bf16 %v1221_v6, %v1218_v5  ;;  %v2639_v9 = vpack.c.bf16 %v1228_v8, %v1225_v7  ;;  %v1220_v5 = vld [vmem:[#allocation8 + $0x940] sm:$0xff]  ;;  %v1223_v7 = vld [vmem:[#allocation8 + $0x958] sm:$0xff]  ;;  %v1273_v8 = vld [vmem:[#allocation8 + $0xae8] sm:$0xff] }
 0x27f   :  { %2556 = vmatprep.subr.bf16.mxu1 %v2555_v11  ;;  %2616 = vmatprep.subr.bf16.mxu0 %v3068_v1  ;;  %v1227_v11 = vld [vmem:[#allocation8 + $0x978] sm:$0xff] }
 0x280   :  { %v2641_v15 = vpack.c.bf16 %v1227_v11, %v1224_v10  ;;  %v1274_v11 = vld [vmem:[#allocation8 + $0xaf0] sm:$0xff] }
 0x282   :  { %2558 = vmatpush1.bf16.msra.mxu1 %v2557_v18  ;;  %2618 = vmatpush3.bf16.msra.mxu0 %v2617_v12  ;;  %v1233_v18 = vld [vmem:[#allocation8 + $0x9a8] sm:$0xff] }
 0x283   :  { %2560 = vmatprep.subr.bf16.mxu1 %v2559_v20  ;;  %2619 = vmatprep.subr.bf16.mxu0 %v3068_v1  ;;  %v1237_v12 = vld [vmem:[#allocation8 + $0x9c8] sm:$0xff]  ;;  %v2645_v20 = vpack.c.bf16 %v1233_v18, %v1230_v17  ;;  %v1226_v17 = vld [vmem:[#allocation8 + $0x970] sm:$0xff] }
 0x284   :  { %v1229_v18 = vld [vmem:[#allocation8 + $0x988] sm:$0xff] }
 0x285   :  { %v2737_v21 = vpack.c.bf16 %v1229_v18, %v1226_v17 }
 0x286   :  { %2562 = vmatpush1.bf16.msra.mxu1 %v2561_v26  ;;  %2621 = vmatpush3.bf16.msra.mxu0 %v2620_v27  ;;  %v2651_v26 = vpack.c.bf16 %v1246_v24, %v1243_v23  ;;  %v1242_v27 = vld [vmem:[#allocation8 + $0x9f0] sm:$0xff]  ;;  %v1283_v23 = vld [vmem:[#allocation8 + $0xb38] sm:$0xff] }
 0x287   :  { %2564 = vmatprep.subr.bf16.mxu1 %v2563_v29  ;;  %2622 = vmatprep.subr.bf16.mxu0 %v3068_v1  ;;  %v1249_v29 = vld [vmem:[#allocation8 + $0xa28] sm:$0xff]  ;;  %v2653_v31 = vpack.c.bf16 %v1245_v28, %v1242_v27  ;;  %v1278_v24 = vld [vmem:[#allocation8 + $0xb10] sm:$0xff]  ;;  %v1232_v27 = vld [vmem:[#allocation8 + $0x9a0] sm:$0xff] }
 0x288   :  { %v2655_v32 = vpack.c.bf16 %v1252_v30, %v1249_v29  ;;  %v1235_v28 = vld [vmem:[#allocation8 + $0x9b8] sm:$0xff]  ;;  %v1285_v29 = vld [vmem:[#allocation8 + $0xb48] sm:$0xff]  ;;  %v1288_v30 = vld [vmem:[#allocation8 + $0xb60] sm:$0xff] }
 0x289   :  { %v2741_v34 = vpack.c.bf16 %v1235_v28, %v1232_v27 }
 0x28a   :  { %2566 = vmatpush1.bf16.msra.mxu1 %v2565_v35  ;;  %2624 = vmatpush3.bf16.msra.mxu0 %v2623_v36  ;;  %v1255_v35 = vld [vmem:[#allocation8 + $0xa58] sm:$0xff]  ;;  %v1258_v36 = vld [vmem:[#allocation8 + $0xa70] sm:$0xff] }
 0x28b   :  { %2568 = vmatprep.subr.bf16.mxu1 %v2567_v42  ;;  %2625 = vmatprep.subr.bf16.mxu0 %v3068_v1  ;;  %v2659_v42 = vpack.c.bf16 %v1258_v36, %v1255_v35  ;;  %v2679_v35 = vpack.c.bf16 %v1288_v30, %v1285_v29  ;;  %v1284_v36 = vld [vmem:[#allocation8 + $0xb40] sm:$0xff] }
 0x28c   :  { %v1308_v29 = vld [vmem:[#allocation8 + $0xc00] sm:$0xff] }
 0x28e   :  { %2570 = vmatpush1.bf16.msra.mxu1 %v2569_v49  ;;  %2627 = vmatpush3.bf16.msra.mxu0 %v2626_v50  ;;  %v1262_v49 = vld [vmem:[#allocation8 + $0xa90] sm:$0xff]  ;;  %v2663_v50 = vpack.c.bf16 %v1264_v47, %v1261_v46  ;;  %v1292_v47 = vld [vmem:[#allocation8 + $0xb80] sm:$0xff] }
 0x28f   :  { %2572 = vmatprep.subr.bf16.mxu1 %v2571_v53  ;;  %2628 = vmatprep.subr.bf16.mxu0 %v3068_v1  ;;  %v1260_v53 = vld [vmem:[#allocation8 + $0xa80] sm:$0xff]  ;;  %v2727_v55 = vpack.c.bf16 %v1265_v52, %v1262_v49  ;;  %v1294_v46 = vld [vmem:[#allocation8 + $0xb90] sm:$0xff]  ;;  %v1295_v49 = vld [vmem:[#allocation8 + $0xb98] sm:$0xff] }
 0x290   :  { %v2665_v56 = vpack.c.bf16 %v1263_v54, %v1260_v53  ;;  %v1290_v54 = vld [vmem:[#allocation8 + $0xb70] sm:$0xff] }
 0x292   :  { %2574 = vmatpush1.bf16.msra.mxu1 %v2573_v59  ;;  %2630 = vmatpush3.bf16.msra.mxu0 %v2629_v60  ;;  %v1267_v59 = vld [vmem:[#allocation8 + $0xab8] sm:$0xff]  ;;  %v2729_v60 = vpack.c.bf16 %v1217_v58, %v1214_v57  ;;  %v2747_v57 = vpack.c.bf16 %v1295_v49, %v1292_v47 }
 0x293   :  { %2632 = vmatprep.subr.bf16.mxu0 %v2631_v61  ;;  %v1270_v61 = vld [vmem:[#allocation8 + $0xad0] sm:$0xff]  ;;  %2728 = vmatprep.subr.bf16.mxu1 %v2727_v55  ;;  %v1293_v55 = vld [vmem:[#allocation8 + $0xb88] sm:$0xff]  ;;  %v1247_v58 = vld [vmem:[#allocation8 + $0xa18] sm:$0xff] }
 0x294   :  { %v2667_v63 = vpack.c.bf16 %v1270_v61, %v1267_v59  ;;  %v1297_v59 = vld [vmem:[#allocation8 + $0xba8] sm:$0xff]  ;;  %v1298_v61 = vld [vmem:[#allocation8 + $0xbb0] sm:$0xff]  ;;  %v2685_v62 = vpack.c.bf16 %v1293_v55, %v1290_v54  ;;  %v1316_v55 = vld [vmem:[#allocation8 + $0xc40] sm:$0xff] }
 0x295   :  { %1065 = vmatmul.mubr.f32.vlgmr.msra.gmra.mrb[6].mxu1 %v3243_v48  ;;  %2199 = vmatmul.mubr.f32.vlgmr.msra.gmra.mrb[6].mxu0 %v3243_v48  ;;  %v2647_v48 = vpack.c.bf16 %v1240_v19, %v1237_v12  ;;  %v1279_v19 = vld [vmem:[#allocation8 + $0xb18] sm:$0xff]  ;;  %v1317_v54 = vld [vmem:[#allocation8 + $0xc48] sm:$0xff] }
 0x296   :  { %2634 = vmatpush1.bf16.msra.mxu0 %v2633_v3  ;;  %v1266_v3 = vld [vmem:[#allocation8 + $0xab0] sm:$0xff]  ;;  %2730 = vmatpush3.bf16.msra.mxu1 %v2729_v60  ;;  %v1300_v60 = vld [vmem:[#allocation8 + $0xbc0] sm:$0xff] }
 0x297   :  { %2636 = vmatprep.subr.bf16.mxu0 %v2635_v4  ;;  %v1269_v4 = vld [vmem:[#allocation8 + $0xac8] sm:$0xff]  ;;  %2732 = vmatprep.subr.bf16.mxu1 %v2731_v2  ;;  %v2687_v2 = vpack.c.bf16 %v1300_v60, %v1297_v59 }
 0x298   :  { %v2669_v6 = vpack.c.bf16 %v1269_v4, %v1266_v3  ;;  %v1296_v3 = vld [vmem:[#allocation8 + $0xba0] sm:$0xff]  ;;  %v1299_v4 = vld [vmem:[#allocation8 + $0xbb8] sm:$0xff] }
 0x29a   :  { %2638 = vmatpush1.bf16.msra.mxu0 %v2637_v39  ;;  %v1276_v39 = vld [vmem:[#allocation8 + $0xb00] sm:$0xff] }
 0x29b   :  { %2640 = vmatprep.subr.bf16.mxu0 %v2639_v9  ;;  %v2733_v9 = vpack.c.bf16 %v1223_v7, %v1220_v5  ;;  %v2671_v10 = vpack.c.bf16 %v1276_v39, %v1273_v8  ;;  %v2751_v5 = vpack.c.bf16 %v1301_v37, %v1298_v61  ;;  %v1253_v7 = vld [vmem:[#allocation8 + $0xa48] sm:$0xff]  ;;  %v2689_v8 = vpack.c.bf16 %v1299_v4, %v1296_v3  ;;  %v1320_v61 = vld [vmem:[#allocation8 + $0xc60] sm:$0xff]  ;;  %v1327_v3 = vld [vmem:[#allocation8 + $0xc98] sm:$0xff] }
 0x29c   :  { %v1330_v4 = vld [vmem:[#allocation8 + $0xcb0] sm:$0xff] }
 0x29d   :  { %2734 = vmatpush3.bf16.msra.mxu1 %v2733_v9  ;;  %v1303_v9 = vld [vmem:[#allocation8 + $0xbd8] sm:$0xff] }
 0x29e   :  { %2642 = vmatpush1.bf16.msra.mxu0 %v2641_v15  ;;  %v2735_v15 = vpack.c.bf16 %v1277_v13, %v1274_v11  ;;  %v1304_v11 = vld [vmem:[#allocation8 + $0xbe0] sm:$0xff] }
 0x29f   :  { %2644 = vmatprep.subr.bf16.mxu0 %v2643_v16  ;;  %v1275_v16 = vld [vmem:[#allocation8 + $0xaf8] sm:$0xff] }
 0x2a0   :  { %v2673_v12 = vpack.c.bf16 %v1275_v16, %v1272_v14  ;;  %2736 = vmatprep.subr.bf16.mxu1 %v2735_v15  ;;  %v1307_v14 = vld [vmem:[#allocation8 + $0xbf8] sm:$0xff]  ;;  %v1302_v15 = vld [vmem:[#allocation8 + $0xbd0] sm:$0xff]  ;;  %v1305_v16 = vld [vmem:[#allocation8 + $0xbe8] sm:$0xff] }
 0x2a1   :  { %2738 = vmatpush3.bf16.msra.mxu1 %v2737_v21  ;;  %v2755_v17 = vpack.c.bf16 %v1307_v14, %v1304_v11  ;;  %v2693_v18 = vpack.c.bf16 %v1305_v16, %v1302_v15  ;;  %v1312_v21 = vld [vmem:[#allocation8 + $0xc20] sm:$0xff]  ;;  %v1333_v11 = vld [vmem:[#allocation8 + $0xcc8] sm:$0xff] }
 0x2a2   :  { %2646 = vmatpush1.bf16.msra.mxu0 %v2645_v20  ;;  %v1282_v20 = vld [vmem:[#allocation8 + $0xb30] sm:$0xff]  ;;  %v1332_v16 = vld [vmem:[#allocation8 + $0xcc0] sm:$0xff] }
 0x2a3   :  { %2648 = vmatprep.subr.bf16.mxu0 %v2647_v48  ;;  %v1280_v48 = vld [vmem:[#allocation8 + $0xb20] sm:$0xff]  ;;  %v2675_v22 = vpack.c.bf16 %v1282_v20, %v1279_v19  ;;  %v1259_v19 = vld [vmem:[#allocation8 + $0xa78] sm:$0xff] }
 0x2a6   :  { %2650 = vmatpush1.bf16.msra.mxu0 %v2649_v25  ;;  %v1281_v25 = vld [vmem:[#allocation8 + $0xb28] sm:$0xff] }
 0x2a7   :  { %2652 = vmatprep.subr.bf16.mxu0 %v2651_v26  ;;  %v2739_v26 = vpack.c.bf16 %v1283_v23, %v1280_v48  ;;  %v2677_v33 = vpack.c.bf16 %v1281_v25, %v1278_v24  ;;  %v1309_v48 = vld [vmem:[#allocation8 + $0xc08] sm:$0xff] }
 0x2a9   :  { %2740 = vmatprep.subr.bf16.mxu1 %v2739_v26  ;;  %v912_v26 = vld [vmem:[#allocation10 + $0x3] sm:$0x7] }
 0x2aa   :  { %2654 = vmatpush1.bf16.msra.mxu0 %v2653_v31  ;;  %v1286_v31 = vld [vmem:[#allocation8 + $0xb50] sm:$0xff]  ;;  %2742 = vmatpush3.bf16.msra.mxu1 %v2741_v34  ;;  %v925_v27 = vrot.slane %v912_v26, %v3232_v51  ;;  %v921_v28 = vrot.slane %v912_v26, %v3210_v38  ;;  %v917_v30 = vrot.slane %v912_v26, %v3215_v40  ;;  %v1313_v34 = vld [vmem:[#allocation8 + $0xc28] sm:$0xff]  ;;  %v1340_v26 = vld [vmem:[#allocation8 + $0xd00] sm:$0xff] }
 0x2ab   :  { %2656 = vmatprep.subr.bf16.mxu0 %v2655_v32  ;;  %v1289_v32 = vld [vmem:[#allocation8 + $0xb68] sm:$0xff] }
 0x2ac   :  { %v2743_v43 = vpack.c.bf16 %v1289_v32, %v1286_v31  ;;  %v1311_v32 = vld [vmem:[#allocation8 + $0xc18] sm:$0xff] }
 0x2ad   :  { %v2697_v47 = vpack.c.bf16 %v1311_v32, %v1308_v29  ;;  %v1348_v29 = vld [vmem:[#allocation8 + $0xd40] sm:$0xff] }
 0x2ae   :  { %2658 = vmatpush1.bf16.msra.mxu0 %v2657_v41  ;;  %v1287_v41 = vld [vmem:[#allocation8 + $0xb58] sm:$0xff]  ;;  %2744 = vmatprep.subr.bf16.mxu1 %v2743_v43  ;;  %v1344_v32 = vld [vmem:[#allocation8 + $0xd20] sm:$0xff] }
 0x2af   :  { %2660 = vmatprep.subr.bf16.mxu0 %v2659_v42  ;;  %v1238_v42 = vld [vmem:[#allocation8 + $0x9d0] sm:$0xff] }
 0x2b0   :  { %v2745_v52 = vpack.c.bf16 %v1241_v44, %v1238_v42  ;;  %v1318_v42 = vld [vmem:[#allocation8 + $0xc50] sm:$0xff] }
 0x2b2   :  { %2662 = vmatpush1.bf16.msra.mxu0 %v2661_v45  ;;  %v1291_v45 = vld [vmem:[#allocation8 + $0xb78] sm:$0xff]  ;;  %2746 = vmatpush3.bf16.msra.mxu1 %v2745_v52 }
 0x2b3   :  { %2664 = vmatprep.subr.bf16.mxu0 %v2663_v50  ;;  %v2681_v50 = vpack.c.bf16 %v1287_v41, %v1284_v36  ;;  %v2683_v53 = vpack.c.bf16 %v1294_v46, %v1291_v45  ;;  %2748 = vmatprep.subr.bf16.mxu1 %v2747_v57  ;;  %v1315_v41 = vld [vmem:[#allocation8 + $0xc38] sm:$0xff]  ;;  %v1321_v57 = vld [vmem:[#allocation8 + $0xc68] sm:$0xff] }
 0x2b6   :  { %2666 = vmatpush1.bf16.msra.mxu0 %v2665_v56  ;;  %v1244_v56 = vld [vmem:[#allocation8 + $0xa00] sm:$0xff] }
 0x2b7   :  { %2668 = vmatprep.subr.bf16.mxu0 %v2667_v63  ;;  %v2749_v63 = vpack.c.bf16 %v1247_v58, %v1244_v56  ;;  %v1319_v56 = vld [vmem:[#allocation8 + $0xc58] sm:$0xff]  ;;  %v1324_v58 = vld [vmem:[#allocation8 + $0xc80] sm:$0xff] }
 0x2b8   :  { %v2763_v60 = vpack.c.bf16 %v1319_v56, %v1316_v55  ;;  %v2703_v37 = vpack.c.bf16 %v1324_v58, %v1321_v57  ;;  %v1688_v55 = vld [vmem:[#allocation11 + $0x100] sm:$0xff]  ;;  %v1689_v56 = vld [vmem:[#allocation11 + $0x108] sm:$0xff] }
 0x2b9   :  { %2750 = vmatpush3.bf16.msra.mxu1 %v2749_v63  ;;  %v1322_v63 = vld [vmem:[#allocation8 + $0xc70] sm:$0xff]  ;;  %v2816_v57 = vpack.c.bf16 %v1689_v56, %v1688_v55 }
 0x2ba   :  { %2670 = vmatpush1.bf16.msra.mxu0 %v2669_v6  ;;  %v1250_v6 = vld [vmem:[#allocation8 + $0xa30] sm:$0xff]  ;;  %2752 = vmatprep.subr.bf16.mxu1 %v2751_v5 }
 0x2bb   :  { %2672 = vmatprep.subr.bf16.mxu0 %v2671_v10  ;;  %v2753_v39 = vpack.c.bf16 %v1253_v7, %v1250_v6  ;;  %v1306_v10 = vld [vmem:[#allocation8 + $0xbf0] sm:$0xff] }
 0x2bc   :  { %v2691_v13 = vpack.c.bf16 %v1306_v10, %v1303_v9  ;;  %v1326_v7 = vld [vmem:[#allocation8 + $0xc90] sm:$0xff]  ;;  %v1328_v9 = vld [vmem:[#allocation8 + $0xca0] sm:$0xff]  ;;  %v1331_v10 = vld [vmem:[#allocation8 + $0xcb8] sm:$0xff] }
 0x2bd   :  { %2754 = vmatpush3.bf16.msra.mxu1 %v2753_v39  ;;  %v1329_v39 = vld [vmem:[#allocation8 + $0xca8] sm:$0xff]  ;;  %v2769_v15 = vpack.c.bf16 %v1331_v10, %v1328_v9  ;;  %v1677_v10 = vld [vmem:[#allocation11 + $0xa8] sm:$0xff] }
 0x2be   :  { %2674 = vmatpush1.bf16.msra.mxu0 %v2673_v12  ;;  %v1256_v12 = vld [vmem:[#allocation8 + $0xa60] sm:$0xff]  ;;  %2756 = vmatprep.subr.bf16.mxu1 %v2755_v17  ;;  %v2709_v14 = vpack.c.bf16 %v1329_v39, %v1326_v7  ;;  %v1672_v58 = vld [vmem:[#allocation11 + $0x80] sm:$0xff]  ;;  %v1669_v55 = vld [vmem:[#allocation11 + $0x68] sm:$0xff] }
 0x2bf   :  { %2676 = vmatprep.subr.bf16.mxu0 %v2675_v22  ;;  %v2757_v20 = vpack.c.bf16 %v1259_v19, %v1256_v12  ;;  %v2695_v22 = vpack.c.bf16 %v1312_v21, %v1309_v48  ;;  %v1334_v12 = vld [vmem:[#allocation8 + $0xcd0] sm:$0xff]  ;;  %v1337_v19 = vld [vmem:[#allocation8 + $0xce8] sm:$0xff] }
 0x2c0   :  { %v1342_v48 = vld [vmem:[#allocation8 + $0xd10] sm:$0xff] }
 0x2c1   :  { %2758 = vmatpush3.bf16.msra.mxu1 %v2757_v20  ;;  %v1339_v20 = vld [vmem:[#allocation8 + $0xcf8] sm:$0xff]  ;;  %v1692_v7 = vld [vmem:[#allocation11 + $0x120] sm:$0xff] }
 0x2c2   :  { %2678 = vmatpush1.bf16.msra.mxu0 %v2677_v33  ;;  %2759 = vmatprep.subr.bf16.mxu1 %v3068_v1  ;;  %v1310_v33 = vld [vmem:[#allocation8 + $0xc10] sm:$0xff] }
 0x2c3   :  { %2680 = vmatprep.subr.bf16.mxu0 %v2679_v35  ;;  %v2760_v49 = vpack.c.bf16 %v1313_v34, %v1310_v33  ;;  %v1347_v34 = vld [vmem:[#allocation8 + $0xd38] sm:$0xff]  ;;  %v1676_v9 = vld [vmem:[#allocation11 + $0xa0] sm:$0xff] }
 0x2c6   :  { %2682 = vmatpush1.bf16.msra.mxu0 %v2681_v50  ;;  %v1314_v50 = vld [vmem:[#allocation8 + $0xc30] sm:$0xff] }
 0x2c7   :  { %2684 = vmatprep.subr.bf16.mxu0 %v2683_v53  ;;  %v2699_v53 = vpack.c.bf16 %v1318_v42, %v1315_v41  ;;  %v2701_v59 = vpack.c.bf16 %v1317_v54, %v1314_v50  ;;  %v1351_v41 = vld [vmem:[#allocation8 + $0xd58] sm:$0xff]  ;;  %v1354_v42 = vld [vmem:[#allocation8 + $0xd70] sm:$0xff]  ;;  %v1352_v50 = vld [vmem:[#allocation8 + $0xd60] sm:$0xff] }
 0x2ca   :  { %2686 = vmatpush1.bf16.msra.mxu0 %v2685_v62  ;;  %v1323_v62 = vld [vmem:[#allocation8 + $0xc78] sm:$0xff] }
 0x2cb   :  { %2688 = vmatprep.subr.bf16.mxu0 %v2687_v2  ;;  %v1325_v2 = vld [vmem:[#allocation8 + $0xc88] sm:$0xff]  ;;  %v2705_v5 = vpack.c.bf16 %v1323_v62, %v1320_v61  ;;  %v1690_v62 = vld [vmem:[#allocation11 + $0x110] sm:$0xff] }
 0x2cc   :  { %v2766_v6 = vpack.c.bf16 %v1325_v2, %v1322_v63  ;;  %v1691_v63 = vld [vmem:[#allocation11 + $0x118] sm:$0xff] }
 0x2ce   :  { %2690 = vmatpush1.bf16.msra.mxu0 %v2689_v8  ;;  %v2707_v8 = vpack.c.bf16 %v1330_v4, %v1327_v3  ;;  %v2819_v3 = vpack.c.bf16 %v1691_v63, %v1690_v62  ;;  %v1674_v4 = vld [vmem:[#allocation11 + $0x90] sm:$0xff] }
 0x2cf   :  { %2692 = vmatprep.subr.bf16.mxu0 %v2691_v13  ;;  %v1336_v13 = vld [vmem:[#allocation8 + $0xce0] sm:$0xff] }
 0x2d0   :  { %v2711_v17 = vpack.c.bf16 %v1336_v13, %v1333_v11  ;;  %v2791_v11 = vpack.c.bf16 %v1677_v10, %v1676_v9  ;;  %v1660_v13 = vld [vmem:[#allocation11 + $0x20] sm:$0xff]  ;;  %v1670_v63 = vld [vmem:[#allocation11 + $0x70] sm:$0xff] }
 0x2d2   :  { %2694 = vmatpush1.bf16.msra.mxu0 %v2693_v18  ;;  %v1335_v18 = vld [vmem:[#allocation8 + $0xcd8] sm:$0xff] }
 0x2d3   :  { %2696 = vmatprep.subr.bf16.mxu0 %v2695_v22  ;;  %v2713_v21 = vpack.c.bf16 %v1335_v18, %v1332_v16  ;;  %v2772_v22 = vpack.c.bf16 %v1337_v19, %v1334_v12  ;;  %v1678_v16 = vld [vmem:[#allocation11 + $0xb0] sm:$0xff]  ;;  %v1695_v12 = vld [vmem:[#allocation11 + $0x138] sm:$0xff] }
 0x2d4   :  { %v1694_v18 = vld [vmem:[#allocation11 + $0x130] sm:$0xff] }
 0x348   :  { %v1972_v23 = vpop.f32.mrb[4].mxu0 }
 0x349   :  { %v1973_v24 = vpop.f32.mrb[5].mxu0 }
 0x34a   :  { %v1974_v25 = vadd.f32 %v1973_v24, %v1972_v23  ;;  %v1338_v23 = vld [vmem:[#allocation8 + $0xcf0] sm:$0xff]  ;;  %v2715_v24 = vpack.c.bf16 %v1342_v48, %v1339_v20  ;;  %v1662_v48 = vld [vmem:[#allocation11 + $0x30] sm:$0xff] }
 0x34c   :  { %v1138_v31 = vadd.f32 %v1974_v25, %v925_v27  ;;  %v1341_v25 = vld [vmem:[#allocation8 + $0xd08] sm:$0xff]  ;;  %v1343_v27 = vld [vmem:[#allocation8 + $0xd18] sm:$0xff] }
 0x368   :  { %v1066_v35 = vpop.f32.mrb[6].mxu1  ;;  %v1207_v36 = vpop.f32.mrb[6].mxu0 }
 0x369   :  { %v3261_v43 = vadd.f32 %v1207_v36, %v1138_v31  ;;  %v1068_v44 = vpop.f32.mrb[7].mxu1  ;;  %v2200_v45 = vpop.f32.mrb[7].mxu0  ;;  %v2841_v52 = vadd.f32 %v1066_v35, %v917_v30  ;;  %v2717_v30 = vpack.c.bf16 %v1341_v25, %v1338_v23  ;;  %v2775_v31 = vpack.c.bf16 %v1343_v27, %v1340_v26  ;;  %v1346_v35 = vld [vmem:[#allocation8 + $0xd30] sm:$0xff]  ;;  %v1349_v36 = vld [vmem:[#allocation8 + $0xd48] sm:$0xff] }
 0x36a   :  { %v2842_v46 = vadd.f32 %v1068_v44, %v921_v28  ;;  %v1345_v28 = vld [vmem:[#allocation8 + $0xd28] sm:$0xff]  ;;  %v2721_v44 = vpack.c.bf16 %v1347_v34, %v1344_v32  ;;  %v2778_v45 = vpack.c.bf16 %v1349_v36, %v1346_v35  ;;  %v1697_v26 = vld [vmem:[#allocation11 + $0x148] sm:$0xff]  ;;  %v1682_v32 = vld [vmem:[#allocation11 + $0xd0] sm:$0xff] }
 0x36b   :  { %v2719_v33 = vpack.c.bf16 %v1348_v29, %v1345_v28  ;;  %v1680_v23 = vld [vmem:[#allocation11 + $0xc0] sm:$0xff]  ;;  %v1698_v34 = vld [vmem:[#allocation11 + $0x150] sm:$0xff]  ;;  %v1699_v35 = vld [vmem:[#allocation11 + $0x158] sm:$0xff] }
 0x36c   :  { %1438 = vmatprep.mubr.f32.mxu0 %v2842_v46  ;;  %1580 = vmatprep.mubr.f32.mxu1 %v2842_v46  ;;  %v1350_v46 = vld [vmem:[#allocation8 + $0xd50] sm:$0xff] }
 0x36d   :  { %1439 = vmatmul.mubr.f32.vlgmr.msra.gmra.mrb[8].mxu0 %v2841_v52  ;;  %1581 = vmatmul.mubr.f32.vlgmr.msra.gmra.mrb[8].mxu1 %v2841_v52  ;;  %v1355_v52 = vld [vmem:[#allocation8 + $0xd78] sm:$0xff]  ;;  %v1696_v25 = vld [vmem:[#allocation11 + $0x140] sm:$0xff] }
 0x36e   :  { %2698 = vmatpush1.bf16.msra.mxu0 %v2697_v47  ;;  %2761 = vmatpush3.bf16.msra.mxu1 %v2760_v49  ;;  %v2723_v47 = vpack.c.bf16 %v1354_v42, %v1351_v41  ;;  %v1353_v49 = vld [vmem:[#allocation8 + $0xd68] sm:$0xff]  ;;  %v2781_v54 = vpack.c.bf16 %v1355_v52, %v1352_v50  ;;  %v1666_v42 = vld [vmem:[#allocation11 + $0x50] sm:$0xff]  ;;  %v1701_v50 = vld [vmem:[#allocation11 + $0x168] sm:$0xff] }
 0x36f   :  { %2700 = vmatprep.subr.bf16.mxu0 %v2699_v53  ;;  %2762 = vmatprep.subr.bf16.mxu1 %v3068_v1  ;;  %v2725_v53 = vpack.c.bf16 %v1353_v49, %v1350_v46  ;;  %v1664_v29 = vld [vmem:[#allocation11 + $0x40] sm:$0xff] }
 0x370   :  { %1509 = vmatprep.mubr.f32.mxu0 %v3067_v0  ;;  %2233 = vmatprep.mubr.msk.f32.mxu1 %vm3069_vm0, %v3067_v0  ;;  %v1684_v46 = vld [vmem:[#allocation11 + $0xe0] sm:$0xff] }
 0x371   :  { %v1700_v49 = vld [vmem:[#allocation11 + $0x160] sm:$0xff] }
 0x372   :  { %2702 = vmatpush1.bf16.msra.mxu0 %v2701_v59  ;;  %2764 = vmatpush3.bf16.msra.mxu1 %v2763_v60  ;;  %v1673_v59 = vld [vmem:[#allocation11 + $0x88] sm:$0xff]  ;;  %v1656_v60 = vld [vmem:[#allocation11] sm:$0xff]  ;;  %v2834_v56 = vpack.c.bf16 %v1701_v50, %v1700_v49 }
 0x373   :  { %2704 = vmatprep.subr.bf16.mxu0 %v2703_v37  ;;  %2765 = vmatprep.subr.bf16.mxu1 %v3068_v1  ;;  %v2783_v61 = vpack.c.bf16 %v1673_v59, %v1672_v58  ;;  %v1657_v37 = vld [vmem:[#allocation11 + $0x8] sm:$0xff]  ;;  %v1702_v58 = vld [vmem:[#allocation11 + $0x170] sm:$0xff]  ;;  %v1703_v59 = vld [vmem:[#allocation11 + $0x178] sm:$0xff] }
 0x374   :  { %v2785_v2 = vpack.c.bf16 %v1657_v37, %v1656_v60  ;;  %v2837_v60 = vpack.c.bf16 %v1703_v59, %v1702_v58  ;;  %v1687_v37 = vld [vmem:[#allocation11 + $0xf8] sm:$0xff] }
 0x376   :  { %2706 = vmatpush1.bf16.msra.mxu0 %v2705_v5  ;;  %2767 = vmatpush3.bf16.msra.mxu1 %v2766_v6  ;;  %v1675_v5 = vld [vmem:[#allocation11 + $0x98] sm:$0xff]  ;;  %v1658_v6 = vld [vmem:[#allocation11 + $0x10] sm:$0xff] }
 0x377   :  { %2708 = vmatprep.subr.bf16.mxu0 %v2707_v8  ;;  %2768 = vmatprep.subr.bf16.mxu1 %v3068_v1  ;;  %v1693_v8 = vld [vmem:[#allocation11 + $0x128] sm:$0xff] }
 0x37a   :  { %2710 = vmatpush1.bf16.msra.mxu0 %v2709_v14  ;;  %2770 = vmatpush3.bf16.msra.mxu1 %v2769_v15  ;;  %v1661_v14 = vld [vmem:[#allocation11 + $0x28] sm:$0xff]  ;;  %v2822_v15 = vpack.c.bf16 %v1693_v8, %v1692_v7 }
 0x37b   :  { %2712 = vmatprep.subr.bf16.mxu0 %v2711_v17  ;;  %2771 = vmatprep.subr.bf16.mxu1 %v3068_v1  ;;  %v1679_v17 = vld [vmem:[#allocation11 + $0xb8] sm:$0xff]  ;;  %v2793_v19 = vpack.c.bf16 %v1661_v14, %v1660_v13 }
 0x37c   :  { %v2795_v20 = vpack.c.bf16 %v1679_v17, %v1678_v16 }
 0x37e   :  { %2714 = vmatpush1.bf16.msra.mxu0 %v2713_v21  ;;  %2773 = vmatpush3.bf16.msra.mxu1 %v2772_v22  ;;  %v1663_v21 = vld [vmem:[#allocation11 + $0x38] sm:$0xff]  ;;  %v2825_v22 = vpack.c.bf16 %v1695_v12, %v1694_v18  ;;  %v1870_v12 = vld [vmem:[#allocation13] ss:$0 sm:$0xff] }
 0x37f   :  { %2716 = vmatprep.subr.bf16.mxu0 %v2715_v24  ;;  %2774 = vmatprep.subr.bf16.mxu1 %v3068_v1  ;;  %v1681_v24 = vld [vmem:[#allocation11 + $0xc8] sm:$0xff]  ;;  %v2797_v27 = vpack.c.bf16 %v1663_v21, %v1662_v48 }
 0x380   :  { %v2799_v28 = vpack.c.bf16 %v1681_v24, %v1680_v23 }
 0x382   :  { %2718 = vmatpush1.bf16.msra.mxu0 %v2717_v30  ;;  %2776 = vmatpush3.bf16.msra.mxu1 %v2775_v31  ;;  %v1665_v30 = vld [vmem:[#allocation11 + $0x48] sm:$0xff]  ;;  %v2828_v31 = vpack.c.bf16 %v1697_v26, %v1696_v25 }
 0x383   :  { %2720 = vmatprep.subr.bf16.mxu0 %v2719_v33  ;;  %2777 = vmatprep.subr.bf16.mxu1 %v3068_v1  ;;  %v1683_v33 = vld [vmem:[#allocation11 + $0xd8] sm:$0xff]  ;;  %v2801_v36 = vpack.c.bf16 %v1665_v30, %v1664_v29 }
 0x384   :  { %v2803_v41 = vpack.c.bf16 %v1683_v33, %v1682_v32 }
 0x386   :  { %2722 = vmatpush1.bf16.msra.mxu0 %v2721_v44  ;;  %2779 = vmatpush3.bf16.msra.mxu1 %v2778_v45  ;;  %v1667_v44 = vld [vmem:[#allocation11 + $0x58] sm:$0xff]  ;;  %v2831_v45 = vpack.c.bf16 %v1699_v35, %v1698_v34 }
 0x387   :  { %2724 = vmatprep.subr.bf16.mxu0 %v2723_v47  ;;  %2780 = vmatprep.subr.bf16.mxu1 %v3068_v1  ;;  %v1685_v47 = vld [vmem:[#allocation11 + $0xe8] sm:$0xff]  ;;  %v2805_v52 = vpack.c.bf16 %v1667_v44, %v1666_v42 }
 0x38a   :  { %2726 = vmatpush1.bf16.msra.mxu0 %v2725_v53  ;;  %2782 = vmatpush3.bf16.msra.mxu1 %v2781_v54  ;;  %v2807_v53 = vpack.c.bf16 %v1685_v47, %v1684_v46  ;;  %v1668_v54 = vld [vmem:[#allocation11 + $0x60] sm:$0xff] }
 0x38b   :  { %2815 = vmatprep.subr.bf16.mxu0 %v3068_v1  ;;  %2784 = vmatprep.subr.bf16.mxu1 %v2783_v61  ;;  %v1686_v61 = vld [vmem:[#allocation11 + $0xf0] sm:$0xff] }
 0x38c   :  { %v2811_v62 = vpack.c.bf16 %v1687_v37, %v1686_v61 }
 0x38d   :  { %1510 = vmatmul.mubr.f32.vlgmr.msra.gmra.mrb[8].mxu0 %v3261_v43  ;;  %2234 = vmatmul.mubr.f32.vlgmr.msra.gmra.mrb[10].mxu1 %v3261_v43  ;;  %v1659_v43 = vld [vmem:[#allocation11 + $0x18] sm:$0xff] }
 0x38e   :  { %2268 = vmatprep.mubr.msk.f32.mxu0 %vm3069_vm0, %v3067_v0  ;;  %2817 = vmatpush3.bf16.msra.mxu0 %v2816_v57  ;;  %v2787_v0 = vpack.c.bf16 %v1675_v5, %v1674_v4  ;;  %v2789_v39 = vpack.c.bf16 %v1659_v43, %v1658_v6  ;;  %v2809_v57 = vpack.c.bf16 %v1669_v55, %v1668_v54 }
 0x38f   :  { %2818 = vmatprep.subr.bf16.mxu0 %v3068_v1  ;;  %2786 = vmatpush3.bf16.msra.mxu1 %v2785_v2  ;;  %v1671_v2 = vld [vmem:[#allocation11 + $0x78] sm:$0xff] }
 0x390   :  { %2788 = vmatprep.subr.bf16.mxu1 %v2787_v0  ;;  %v1357_v0 = vld [vmem:[#allocation10 + $0x6] sm:$0x7] }
 0x391   :  { %v1370_v43 = vrot.slane %v1357_v0, %v3232_v51  ;;  %v1362_v7 = vrot.slane %v1357_v0, %v3215_v40 }
 0x392   :  { %2820 = vmatpush3.bf16.msra.mxu0 %v2819_v3  ;;  %v2813_v3 = vpack.c.bf16 %v1671_v2, %v1670_v63 }
 0x393   :  { %2821 = vmatprep.subr.bf16.mxu0 %v3068_v1  ;;  %2790 = vmatpush3.bf16.msra.mxu1 %v2789_v39 }
 0x394   :  { %2792 = vmatprep.subr.bf16.mxu1 %v2791_v11 }
 0x396   :  { %2823 = vmatpush3.bf16.msra.mxu0 %v2822_v15 }
 0x397   :  { %2824 = vmatprep.subr.bf16.mxu0 %v3068_v1  ;;  %2794 = vmatpush3.bf16.msra.mxu1 %v2793_v19 }
 0x398   :  { %2796 = vmatprep.subr.bf16.mxu1 %v2795_v20 }
 0x39a   :  { %2826 = vmatpush3.bf16.msra.mxu0 %v2825_v22 }
 0x39b   :  { %2827 = vmatprep.subr.bf16.mxu0 %v3068_v1  ;;  %2798 = vmatpush3.bf16.msra.mxu1 %v2797_v27 }
 0x39c   :  { %2800 = vmatprep.subr.bf16.mxu1 %v2799_v28 }
 0x39e   :  { %2829 = vmatpush3.bf16.msra.mxu0 %v2828_v31 }
 0x39f   :  { %2830 = vmatprep.subr.bf16.mxu0 %v3068_v1  ;;  %2802 = vmatpush3.bf16.msra.mxu1 %v2801_v36 }
 0x3a0   :  { %2804 = vmatprep.subr.bf16.mxu1 %v2803_v41 }
 0x3a2   :  { %2832 = vmatpush3.bf16.msra.mxu0 %v2831_v45 }
 0x3a3   :  { %2833 = vmatprep.subr.bf16.mxu0 %v3068_v1  ;;  %2806 = vmatpush3.bf16.msra.mxu1 %v2805_v52 }
 0x3a4   :  { %2808 = vmatprep.subr.bf16.mxu1 %v2807_v53 }
 0x3a6   :  { %2835 = vmatpush3.bf16.msra.mxu0 %v2834_v56 }
 0x3a7   :  { %2836 = vmatprep.subr.bf16.mxu0 %v3068_v1  ;;  %2810 = vmatpush3.bf16.msra.mxu1 %v2809_v57  ;;  %v1366_v1 = vrot.slane %v1357_v0, %v3210_v38 }
 0x3a8   :  { %2812 = vmatprep.subr.bf16.mxu1 %v2811_v62 }
 0x3aa   :  { %2838 = vmatpush3.bf16.msra.mxu0 %v2837_v60 }
 0x3ab   :  { %2814 = vmatpush3.bf16.msra.mxu1 %v2813_v3 }
 0x440   :  { %v2024_v4 = vpop.f32.mrb[8].mxu1 }
 0x441   :  { %v2025_v5 = vpop.f32.mrb[9].mxu1 }
 0x442   :  { %v2026_v6 = vadd.f32 %v2025_v5, %v2024_v4 }
 0x444   :  { %v1583_v8 = vadd.f32 %v2026_v6, %v1370_v43 }
 0x460   :  { %v1511_v39 = vpop.f32.mrb[8].mxu0  ;;  %v1652_v9 = vpop.f32.mrb[10].mxu1 }
 0x461   :  { %v1653_v10 = vadd.f32 %v1652_v9, %v1583_v8  ;;  %v1513_v11 = vpop.f32.mrb[9].mxu0  ;;  %v2235_v13 = vpop.f32.mrb[11].mxu1  ;;  %v2843_v15 = vadd.f32 %v1511_v39, %v1362_v7 }
 0x462   :  { %v2844_v14 = vadd.f32 %v1513_v11, %v1366_v1 }
 0x463   :  { %2269 = vmatmul.mubr.f32.vlgmr.msra.gmra.mrb[10].mxu0 %v1653_v10 }
 0x464   :  { %1775 = vmatprep.mubr.f32.mxu1 %v2844_v14 }
 0x465   :  { %1776 = vmatmul.mubr.f32.vlgmr.msra.gmra.mrb[12].mxu1 %v2843_v15 }
 0x536   :  { %v1847_v16 = vpop.f32.mrb[10].mxu0 }
 0x537   :  { %v2270_v17 = vpop.f32.mrb[11].mxu0 }
 0x538   :  { %v2076_v18 = vpop.f32.mrb[12].mxu1 }
 0x539   :  { %v2077_v51 = vpop.f32.mrb[13].mxu1 }
 0x53a   :  { %v2078_v19 = vadd.f32 %v2077_v51, %v2076_v18 }
 0x53c   :  { %v1778_v38 = vadd.f32 %v2078_v19, %v1870_v12 }
 0x53e   :  { %v1848_v40 = vadd.f32 %v1847_v16, %v1778_v38 }
 0x540   :  { %1851 = vst [vmem:[#allocation14] sm:$0x3] %v1848_v40 }
 0x541   :  { %3033 = shalt.err (!%p3030_p4)
}
 0x542   :  { %s3034_s17 = scalar_lea.hbm %s3307_s7, 32 }
 0x543   :  { %p3035_p5 = scmp.ne.s32.totalorder %s3307_s7, %s3034_s17  ;;  %p3038_p6 = scmp.lt.u32.totalorder %s3034_s17, %s3307_s7 }
 0x545   :  { %p3040_p7 = pnand %p3038_p6, %p3035_p5 }
 0x547   :  { %3043 = shalt.err (!%p3040_p7)
}
 0x548   :  { %1861 = dma.vmem_to_hbm [thread:$0]  %s1859_s11, 32, %s3307_s7, [#allocation4]  }
 0x549   :  { %3052 = dma.done.wait [#allocation4], 32  }
 0x54a   :  { %3053 = vsyncadd [#allocation4], 4294967264 }
 0x54b   :  { %1865 = vsyncpa [#allocation3], 1 }
 0x54c   :  { %1866 = vsyncpa [#allocation6], 1 }
 0x54d   :  { %1867 = vsyncpa [#allocation9], 1 }
 0x54e   :  { %1868 = vsyncpa [#allocation12], 1 }
 0x54f   :  { %1869 = vsyncpa [#allocation4], 1 }

</bundles_post_ra>
